<compile_context>
chip_gen: v7x
topology: tpu7x:2x2x1
jax: 0.10.0
libtpu: 0.0.40
codegen_flags: <defaults>
</compile_context>

<pallas_src>
import functools

import jax
import jax.numpy as jnp
from jax import lax
from jax.experimental import pallas as pl
from jax.experimental.pallas import tpu as pltpu


_W_ORDER = ("cls_token", "pos_emb", "ln1_g", "ln1_b", "w_qkv", "w_o", "b_o",
            "ln2_g", "ln2_b", "w_ff1", "b_ff1", "w_ff2", "b_ff2",
            "w_inter", "w_cls", "b_cls")


def _ln(x, g, b, eps):
    """Pre-LN with two-pass variance (avoids E[x^2]-E[x]^2 cancellation on gram-scale inputs)."""
    m = jnp.mean(x, axis=-1, keepdims=True)
    d = x - m
    v = jnp.mean(d * d, axis=-1, keepdims=True)
    return d * lax.rsqrt(v + eps) * g + b


# ----------------------------------------------------------------------------
# Fused kernel: Gram -> ViT embedding -> depth x (pre-LN MHA + pre-LN FF) -> head
# ----------------------------------------------------------------------------
def _fused_kernel(toks_t_ref, toks_ref, cls_ref, pos_ref,
                  ln1g_ref, ln1b_ref, wqkv_ref, wo_ref, bo_ref,
                  ln2g_ref, ln2b_ref, w1_ref, b1_ref, w2_ref, b2_ref,
                  wi_ref, wc_ref, bc_ref, out_ref,
                  *, depth, heads, dim_head, bb):
    eps = 1e-5
    scale = dim_head ** -0.5
    he = heads * dim_head
    bf = jnp.bfloat16

    cls_tok = cls_ref[0]                        # (1, D)  f32
    pos = pos_ref[0]                            # (N, D)  f32   (row N-1 = cls position)
    n_seq = pos.shape[0]

    # Load every layer's stacked weights exactly once (re-used across the in-kernel batch loop).
    ln1g = [ln1g_ref[d] for d in range(depth)]
    ln1b = [ln1b_ref[d] for d in range(depth)]
    wqkv = [wqkv_ref[d] for d in range(depth)]  # (D, 3*H*E) bf16, fused Q|K|V, head-major
    wo = [wo_ref[d] for d in range(depth)]      # (H*E, D)   bf16
    bo = [bo_ref[d] for d in range(depth)]
    ln2g = [ln2g_ref[d] for d in range(depth)]
    ln2b = [ln2b_ref[d] for d in range(depth)]
    w1 = [w1_ref[d] for d in range(depth)]
    b1 = [b1_ref[d] for d in range(depth)]
    w2 = [w2_ref[d] for d in range(depth)]
    b2 = [b2_ref[d] for d in range(depth)]
    w_inter = wi_ref[...]                       # (D, F)  bf16
    w_cls = wc_ref[...]                         # (F, 2)  bf16
    b_cls = bc_ref[...]                         # (1, 2)  f32

    rows = []
    for b in range(bb):                         # static batch loop; LLO interleaves elements
        tok_t = toks_t_ref[b]                   # (C, L) bf16 (pre-transposed in the wrapper)
        tok = toks_ref[b]                       # (L, C) bf16
        # feat = torch.bmm(feat.transpose(1, 2), feat): plain A@B on the MXU, no in-kernel vxpose.
        gram = jnp.dot(tok_t, tok, preferred_element_type=jnp.float32)      # (C, C) f32

        # ViT embedding: cls token appended LAST (gram rows stay sublane-aligned), + pos-emb.
        x = jnp.concatenate([gram, cls_tok], axis=0) + pos                  # (N, D) f32

        # TODO(synk): for depth > 1 switch to lax.fori_loop(..., unroll=True) over ref[d]
        # to bound live ranges; at L1_depth=1 the static unroll is optimal.
        for d in range(depth):
            # ---- pre-norm multi-head attention (fused QKV projection) ----
            xn = _ln(x, ln1g[d], ln1b[d], eps).astype(bf)
            qkv = jnp.dot(xn, wqkv[d], preferred_element_type=jnp.float32)  # (N, 3*H*E) f32
            o_heads = []
            for h in range(heads):
                qh = qkv[:, h * dim_head:(h + 1) * dim_head].astype(bf)
                kh = qkv[:, he + h * dim_head: he + (h + 1) * dim_head].astype(bf)
                vh = qkv[:, 2 * he + h * dim_head: 2 * he + (h + 1) * dim_head].astype(bf)
                s = jnp.einsum('qe,ke->qk', qh, kh,
                               preferred_element_type=jnp.float32) * scale
                s = s - jnp.max(s, axis=-1, keepdims=True)
                p = jnp.exp(s)
                p = p * pl.reciprocal(jnp.sum(p, axis=-1, keepdims=True), approx=True)
                o_heads.append(jnp.dot(p.astype(bf), vh,
                                       preferred_element_type=jnp.float32))
            # heads concatenated on the lane axis -> single contraction-(H*E) output projection
            o_flat = jnp.concatenate(o_heads, axis=-1).astype(bf)           # (N, H*E)
            x = x + jnp.dot(o_flat, wo[d], preferred_element_type=jnp.float32) + bo[d]

            # ---- pre-norm feed-forward ----
            xn = _ln(x, ln2g[d], ln2b[d], eps).astype(bf)
            h1 = jnp.dot(xn, w1[d], preferred_element_type=jnp.float32) + b1[d]
            # TODO(synk): tanh-approx GELU (torch nn.GELU default is exact erf)
            h1 = jax.nn.gelu(h1).astype(bf)
            x = x + jnp.dot(h1, w2[d], preferred_element_type=jnp.float32) + b2[d]

        # ---- head: pooled cls token -> inter_feat (Linear no-bias + LeakyReLU) -> cls ----
        pooled = x[n_seq - 1:n_seq, :].astype(bf)               # (1, D)  cls token (last row)
        hid = jnp.dot(pooled, w_inter, preferred_element_type=jnp.float32)
        hid = jnp.where(hid >= 0.0, hid, 0.01 * hid)            # LeakyReLU(0.01)
        rows.append(jnp.dot(hid.astype(bf), w_cls,
                            preferred_element_type=jnp.float32) + b_cls)    # (1, 2)

    out_ref[...] = jnp.stack(rows, axis=0)                      # (bb, 1, 2)


# ----------------------------------------------------------------------------
# Full forward  ==  SingleViT2.forward (train mode, masked_reconstruction=False)
# ----------------------------------------------------------------------------
def _steps_for_batch(batch):
    """v7x has 2 TensorCores -> 2 grid steps; single-TC v5e/v6e -> fold the batch into 1 step."""
    try:
        kind = jax.devices()[0].device_kind.lower()
    except Exception:
        kind = ""
    n_tc = 2 if ("v7" in kind or "7x" in kind) else 1
    return n_tc if (n_tc > 1 and batch % n_tc == 0) else 1


def single_vit2_forward(frames, params, *, heads, dim_head):
    # frames: (FRR, B, C, H, W)  -- X['mask'][k] stacked, NCHW like PyTorch.
    FRR, B, C, H, W = frames.shape

    # TODO(synk): pretrained backbone (ResNet50) skipped — encoder treated as identity.
    # Rearrange('b c h w -> b (h w) c') per frame, then torch.cat(..., dim=1); bf16 MXU operands.
    toks = jnp.transpose(frames, (1, 0, 3, 4, 2)).reshape(B, FRR * H * W, C).astype(jnp.bfloat16)
    # Free XLA transpose in HBM so the in-kernel Gram matmul is a plain A@B (no vxpose).
    toks_t = jnp.transpose(toks, (0, 2, 1))                      # (B, C, L)

    depth = params["ln1_g"].shape[0]
    L = toks.shape[1]

    steps = _steps_for_batch(B)
    bb = B // steps

    kernel = functools.partial(_fused_kernel, depth=depth, heads=heads,
                               dim_head=dim_head, bb=bb)

    def _resident(arr):                         # whole array kept VMEM-resident across the grid
        nd = arr.ndim
        return pl.BlockSpec(arr.shape, lambda b, _nd=nd: (0,) * _nd)

    weights = [params[k] for k in _W_ORDER]

    # TODO(synk): with real encoder dims (in_feat_dim=2048, depth>1) the all-resident stacked
    # weights exceed v7x's 64 MiB VMEM — move depth onto a grid axis / stream layer weights then.
    cls_out = pl.pallas_call(
        kernel,
        out_shape=jax.ShapeDtypeStruct((B, 1, 2), jnp.float32),
        grid=(steps,),
        in_specs=[pl.BlockSpec((bb, C, L), lambda b: (b, 0, 0)),
                  pl.BlockSpec((bb, L, C), lambda b: (b, 0, 0))]
                 + [_resident(w) for w in weights],
        out_specs=pl.BlockSpec((bb, 1, 2), lambda b: (b, 0, 0)),
        compiler_params=pltpu.CompilerParams(
            dimension_semantics=("parallel",),
            vmem_limit_bytes=32 * 1024 * 1024),
    )(toks_t, toks, *weights)

    rec_seq = []   # masked_reconstruction=False -> Generator path disabled
    return cls_out[:, 0, :], rec_seq


# ----------------------------------------------------------------------------
# Parameters (deterministic, in-script).  Per-layer weights stacked along depth; Q/K/V fused
# into one (D, 3*heads*dim_head) matrix (head-major); output projection flattened to
# (heads*dim_head, D).  Matmul weights stored bf16, norms / biases / embeddings f32.
# ----------------------------------------------------------------------------
def init_params(key, *, dim, heads, dim_head, mlp_dim, depth, n_features):
    keys = jax.random.split(key, 8)
    bf = jnp.bfloat16

    def nrm(k, shape, scale=0.02):
        return scale * jax.random.normal(k, shape, jnp.float32)

    return {
        "cls_token": nrm(keys[0], (1, 1, dim), 1.0),
        # num_patches = dim (Gram output); cls position is the LAST row (kernel appends cls last).
        "pos_emb":   nrm(keys[1], (1, dim + 1, dim), 1.0),
        "ln1_g": jnp.ones((depth, 1, dim), jnp.float32),
        "ln1_b": jnp.zeros((depth, 1, dim), jnp.float32),
        "w_qkv": nrm(keys[2], (depth, dim, 3 * heads * dim_head)).astype(bf),
        "w_o":   nrm(keys[3], (depth, heads * dim_head, dim)).astype(bf),
        "b_o":   jnp.zeros((depth, 1, dim), jnp.float32),
        "ln2_g": jnp.ones((depth, 1, dim), jnp.float32),
        "ln2_b": jnp.zeros((depth, 1, dim), jnp.float32),
        "w_ff1": nrm(keys[4], (depth, dim, mlp_dim)).astype(bf),
        "b_ff1": jnp.zeros((depth, 1, mlp_dim), jnp.float32),
        "w_ff2": nrm(keys[5], (depth, mlp_dim, dim)).astype(bf),
        "b_ff2": jnp.zeros((depth, 1, dim), jnp.float32),
        "w_inter": nrm(keys[6], (dim, n_features)).astype(bf),   # Linear(in_feat_dim, n_features, bias=False)
        "w_cls":   nrm(keys[7], (n_features, 2)).astype(bf),     # Linear(n_features, 2)
        "b_cls":   jnp.zeros((1, 2), jnp.float32),
    }


if __name__ == "__main__":
    key = jax.random.PRNGKey(0)
    # Small, module-consistent shapes:
    #   FRR=2 frames, B=2, feature-map channels (=in_feat_dim=num_patches)=32, 4x4 spatial
    FRR, B, C, H, W = 2, 2, 32, 4, 4
    heads, dim_head, depth, n_features = 2, 16, 1, 16    # args.heads, L1_depth, n_features
    mlp_dim = n_features                                  # ViT(mlp_dim=args.n_features)

    k_in, k_par = jax.random.split(key)
    frames = jax.random.normal(k_in, (FRR, B, C, H, W), jnp.float32)
    params = init_params(k_par, dim=C, heads=heads, dim_head=dim_head,
                         mlp_dim=mlp_dim, depth=depth, n_features=n_features)

    cls_out, rec_seq = single_vit2_forward(frames, params, heads=heads, dim_head=dim_head)
    cls_out = jax.block_until_ready(cls_out)
    assert cls_out.shape == (B, 2) and cls_out.dtype == jnp.float32
    assert rec_seq == []
    print("KERNEL_OK")
</pallas_src>

<mosaic_0001>
module attributes {stable_mosaic.version = 11 : i64} {
  func.func @_fused_kernel(%arg0: i32, %arg1: memref<2x32x32xbf16, #tpu.memory_space<vmem>>, %arg2: memref<2x32x32xbf16, #tpu.memory_space<vmem>>, %arg3: memref<1x1x32xf32, #tpu.memory_space<vmem>>, %arg4: memref<1x33x32xf32, #tpu.memory_space<vmem>>, %arg5: memref<1x1x32xf32, #tpu.memory_space<vmem>>, %arg6: memref<1x1x32xf32, #tpu.memory_space<vmem>>, %arg7: memref<1x32x96xbf16, #tpu.memory_space<vmem>>, %arg8: memref<1x32x32xbf16, #tpu.memory_space<vmem>>, %arg9: memref<1x1x32xf32, #tpu.memory_space<vmem>>, %arg10: memref<1x1x32xf32, #tpu.memory_space<vmem>>, %arg11: memref<1x1x32xf32, #tpu.memory_space<vmem>>, %arg12: memref<1x32x16xbf16, #tpu.memory_space<vmem>>, %arg13: memref<1x1x16xf32, #tpu.memory_space<vmem>>, %arg14: memref<1x16x32xbf16, #tpu.memory_space<vmem>>, %arg15: memref<1x1x32xf32, #tpu.memory_space<vmem>>, %arg16: memref<32x16xbf16, #tpu.memory_space<vmem>>, %arg17: memref<16x2xbf16, #tpu.memory_space<vmem>>, %arg18: memref<1x2xf32, #tpu.memory_space<vmem>>, %arg19: memref<2x1x2xf32, #tpu.memory_space<vmem>>) attributes {dimension_semantics = [#tpu.dimension_semantics<parallel>], iteration_bounds = array<i64: 1>, scalar_prefetch = 0 : i64, scratch_operands = 0 : i64, tpu.core_type = #tpu.core_type<tc>, window_params = [{transform_indices = @transform_0, window_bounds = array<i64: 2, 32, 32>}, {transform_indices = @transform_1, window_bounds = array<i64: 2, 32, 32>}, {pipeline_mode = #tpu.pipeline_mode<synchronous>, transform_indices = @transform_2, window_bounds = array<i64: 1, 1, 32>}, {pipeline_mode = #tpu.pipeline_mode<synchronous>, transform_indices = @transform_3, window_bounds = array<i64: 1, 33, 32>}, {pipeline_mode = #tpu.pipeline_mode<synchronous>, transform_indices = @transform_4, window_bounds = array<i64: 1, 1, 32>}, {pipeline_mode = #tpu.pipeline_mode<synchronous>, transform_indices = @transform_5, window_bounds = array<i64: 1, 1, 32>}, {pipeline_mode = #tpu.pipeline_mode<synchronous>, transform_indices = @transform_6, window_bounds = array<i64: 1, 32, 96>}, {pipeline_mode = #tpu.pipeline_mode<synchronous>, transform_indices = @transform_7, window_bounds = array<i64: 1, 32, 32>}, {pipeline_mode = #tpu.pipeline_mode<synchronous>, transform_indices = @transform_8, window_bounds = array<i64: 1, 1, 32>}, {pipeline_mode = #tpu.pipeline_mode<synchronous>, transform_indices = @transform_9, window_bounds = array<i64: 1, 1, 32>}, {pipeline_mode = #tpu.pipeline_mode<synchronous>, transform_indices = @transform_10, window_bounds = array<i64: 1, 1, 32>}, {pipeline_mode = #tpu.pipeline_mode<synchronous>, transform_indices = @transform_11, window_bounds = array<i64: 1, 32, 16>}, {pipeline_mode = #tpu.pipeline_mode<synchronous>, transform_indices = @transform_12, window_bounds = array<i64: 1, 1, 16>}, {pipeline_mode = #tpu.pipeline_mode<synchronous>, transform_indices = @transform_13, window_bounds = array<i64: 1, 16, 32>}, {pipeline_mode = #tpu.pipeline_mode<synchronous>, transform_indices = @transform_14, window_bounds = array<i64: 1, 1, 32>}, {pipeline_mode = #tpu.pipeline_mode<synchronous>, transform_indices = @transform_15, window_bounds = array<i64: 32, 16>}, {pipeline_mode = #tpu.pipeline_mode<synchronous>, transform_indices = @transform_16, window_bounds = array<i64: 16, 2>}, {pipeline_mode = #tpu.pipeline_mode<synchronous>, transform_indices = @transform_17, window_bounds = array<i64: 1, 2>}, {transform_indices = @transform_18, window_bounds = array<i64: 2, 1, 2>}]} {
    %c0 = arith.constant 0 : index
    %c0_0 = arith.constant 0 : index
    %c0_1 = arith.constant 0 : index
    %0 = vector.load %arg3[%c0, %c0_0, %c0_1] : memref<1x1x32xf32, #tpu.memory_space<vmem>>, vector<1x1x32xf32>
    %1 = vector.shape_cast %0 : vector<1x1x32xf32> to vector<1x32xf32>
    %c0_2 = arith.constant 0 : index
    %c0_3 = arith.constant 0 : index
    %c0_4 = arith.constant 0 : index
    %2 = vector.load %arg4[%c0_2, %c0_3, %c0_4] : memref<1x33x32xf32, #tpu.memory_space<vmem>>, vector<1x33x32xf32>
    %3 = vector.shape_cast %2 : vector<1x33x32xf32> to vector<33x32xf32>
    %c0_5 = arith.constant 0 : index
    %c0_6 = arith.constant 0 : index
    %c0_7 = arith.constant 0 : index
    %4 = vector.load %arg5[%c0_5, %c0_6, %c0_7] : memref<1x1x32xf32, #tpu.memory_space<vmem>>, vector<1x1x32xf32>
    %5 = vector.shape_cast %4 : vector<1x1x32xf32> to vector<1x32xf32>
    %c0_8 = arith.constant 0 : index
    %c0_9 = arith.constant 0 : index
    %c0_10 = arith.constant 0 : index
    %6 = vector.load %arg6[%c0_8, %c0_9, %c0_10] : memref<1x1x32xf32, #tpu.memory_space<vmem>>, vector<1x1x32xf32>
    %7 = vector.shape_cast %6 : vector<1x1x32xf32> to vector<1x32xf32>
    %c0_11 = arith.constant 0 : index
    %c0_12 = arith.constant 0 : index
    %c0_13 = arith.constant 0 : index
    %8 = vector.load %arg7[%c0_11, %c0_12, %c0_13] : memref<1x32x96xbf16, #tpu.memory_space<vmem>>, vector<1x32x96xbf16>
    %9 = vector.shape_cast %8 : vector<1x32x96xbf16> to vector<32x96xbf16>
    %c0_14 = arith.constant 0 : index
    %c0_15 = arith.constant 0 : index
    %c0_16 = arith.constant 0 : index
    %10 = vector.load %arg8[%c0_14, %c0_15, %c0_16] : memref<1x32x32xbf16, #tpu.memory_space<vmem>>, vector<1x32x32xbf16>
    %11 = vector.shape_cast %10 : vector<1x32x32xbf16> to vector<32x32xbf16>
    %c0_17 = arith.constant 0 : index
    %c0_18 = arith.constant 0 : index
    %c0_19 = arith.constant 0 : index
    %12 = vector.load %arg9[%c0_17, %c0_18, %c0_19] : memref<1x1x32xf32, #tpu.memory_space<vmem>>, vector<1x1x32xf32>
    %13 = vector.shape_cast %12 : vector<1x1x32xf32> to vector<1x32xf32>
    %c0_20 = arith.constant 0 : index
    %c0_21 = arith.constant 0 : index
    %c0_22 = arith.constant 0 : index
    %14 = vector.load %arg10[%c0_20, %c0_21, %c0_22] : memref<1x1x32xf32, #tpu.memory_space<vmem>>, vector<1x1x32xf32>
    %15 = vector.shape_cast %14 : vector<1x1x32xf32> to vector<1x32xf32>
    %c0_23 = arith.constant 0 : index
    %c0_24 = arith.constant 0 : index
    %c0_25 = arith.constant 0 : index
    %16 = vector.load %arg11[%c0_23, %c0_24, %c0_25] : memref<1x1x32xf32, #tpu.memory_space<vmem>>, vector<1x1x32xf32>
    %17 = vector.shape_cast %16 : vector<1x1x32xf32> to vector<1x32xf32>
    %c0_26 = arith.constant 0 : index
    %c0_27 = arith.constant 0 : index
    %c0_28 = arith.constant 0 : index
    %18 = vector.load %arg12[%c0_26, %c0_27, %c0_28] : memref<1x32x16xbf16, #tpu.memory_space<vmem>>, vector<1x32x16xbf16>
    %19 = vector.shape_cast %18 : vector<1x32x16xbf16> to vector<32x16xbf16>
    %c0_29 = arith.constant 0 : index
    %c0_30 = arith.constant 0 : index
    %c0_31 = arith.constant 0 : index
    %20 = vector.load %arg13[%c0_29, %c0_30, %c0_31] : memref<1x1x16xf32, #tpu.memory_space<vmem>>, vector<1x1x16xf32>
    %21 = vector.shape_cast %20 : vector<1x1x16xf32> to vector<1x16xf32>
    %c0_32 = arith.constant 0 : index
    %c0_33 = arith.constant 0 : index
    %c0_34 = arith.constant 0 : index
    %22 = vector.load %arg14[%c0_32, %c0_33, %c0_34] : memref<1x16x32xbf16, #tpu.memory_space<vmem>>, vector<1x16x32xbf16>
    %23 = vector.shape_cast %22 : vector<1x16x32xbf16> to vector<16x32xbf16>
    %c0_35 = arith.constant 0 : index
    %c0_36 = arith.constant 0 : index
    %c0_37 = arith.constant 0 : index
    %24 = vector.load %arg15[%c0_35, %c0_36, %c0_37] : memref<1x1x32xf32, #tpu.memory_space<vmem>>, vector<1x1x32xf32>
    %25 = vector.shape_cast %24 : vector<1x1x32xf32> to vector<1x32xf32>
    %c0_38 = arith.constant 0 : index
    %c0_39 = arith.constant 0 : index
    %26 = vector.load %arg16[%c0_38, %c0_39] : memref<32x16xbf16, #tpu.memory_space<vmem>>, vector<32x16xbf16>
    %c0_40 = arith.constant 0 : index
    %c0_41 = arith.constant 0 : index
    %27 = vector.load %arg17[%c0_40, %c0_41] : memref<16x2xbf16, #tpu.memory_space<vmem>>, vector<16x2xbf16>
    %c0_42 = arith.constant 0 : index
    %c0_43 = arith.constant 0 : index
    %28 = vector.load %arg18[%c0_42, %c0_43] : memref<1x2xf32, #tpu.memory_space<vmem>>, vector<1x2xf32>
    %c0_44 = arith.constant 0 : index
    %c0_45 = arith.constant 0 : index
    %c0_46 = arith.constant 0 : index
    %29 = vector.load %arg1[%c0_44, %c0_45, %c0_46] : memref<2x32x32xbf16, #tpu.memory_space<vmem>>, vector<1x32x32xbf16>
    %30 = vector.shape_cast %29 : vector<1x32x32xbf16> to vector<32x32xbf16>
    %c0_47 = arith.constant 0 : index
    %c0_48 = arith.constant 0 : index
    %c0_49 = arith.constant 0 : index
    %31 = vector.load %arg2[%c0_47, %c0_48, %c0_49] : memref<2x32x32xbf16, #tpu.memory_space<vmem>>, vector<1x32x32xbf16>
    %32 = vector.shape_cast %31 : vector<1x32x32xbf16> to vector<32x32xbf16>
    %cst = arith.constant dense<0.000000e+00> : vector<32x32xf32>
    %33 = tpu.matmul %30, %32, %cst {dimension_numbers = #tpu.dot_dimension_numbers<[1], [0], [0], [1], [0, 0, 1, 1], [], []>} : vector<32x32xbf16>, vector<32x32xbf16>, vector<32x32xf32> -> vector<32x32xf32>
    %34 = tpu.concatenate %33, %1 in 0 : vector<32x32xf32>, vector<1x32xf32> -> vector<33x32xf32>
    %35 = arith.addf %34, %3 : vector<33x32xf32>
    %cst_50 = arith.constant dense<0.000000e+00> : vector<33xf32>
    %36 = vector.multi_reduction <add>, %35, %cst_50 [1] : vector<33x32xf32> to vector<33xf32>
    %37 = vector.shape_cast %36 : vector<33xf32> to vector<33x1xf32>
    %cst_51 = arith.constant 3.200000e+01 : f32
    %38 = vector.broadcast %cst_51 : f32 to vector<33x1xf32>
    %39 = arith.divf %37, %38 : vector<33x1xf32>
    %40 = vector.broadcast %39 : vector<33x1xf32> to vector<33x32xf32>
    %41 = arith.subf %35, %40 : vector<33x32xf32>
    %42 = arith.mulf %41, %41 : vector<33x32xf32>
    %cst_52 = arith.constant dense<0.000000e+00> : vector<33xf32>
    %43 = vector.multi_reduction <add>, %42, %cst_52 [1] : vector<33x32xf32> to vector<33xf32>
    %44 = vector.shape_cast %43 : vector<33xf32> to vector<33x1xf32>
    %cst_53 = arith.constant 3.200000e+01 : f32
    %45 = vector.broadcast %cst_53 : f32 to vector<33x1xf32>
    %46 = arith.divf %44, %45 : vector<33x1xf32>
    %cst_54 = arith.constant 9.99999974E-6 : f32
    %47 = vector.broadcast %cst_54 : f32 to vector<33x1xf32>
    %48 = arith.addf %46, %47 : vector<33x1xf32>
    %49 = math.rsqrt %48 : vector<33x1xf32>
    %50 = vector.broadcast %49 : vector<33x1xf32> to vector<33x32xf32>
    %51 = arith.mulf %41, %50 : vector<33x32xf32>
    %52 = vector.broadcast %5 : vector<1x32xf32> to vector<33x32xf32>
    %53 = arith.mulf %51, %52 : vector<33x32xf32>
    %54 = vector.broadcast %7 : vector<1x32xf32> to vector<33x32xf32>
    %55 = arith.addf %53, %54 : vector<33x32xf32>
    %56 = arith.truncf %55 : vector<33x32xf32> to vector<33x32xbf16>
    %cst_55 = arith.constant dense<0.000000e+00> : vector<33x96xf32>
    %57 = tpu.matmul %56, %9, %cst_55 {dimension_numbers = #tpu.dot_dimension_numbers<[1], [0], [0], [1], [0, 0, 1, 1], [], []>} : vector<33x32xbf16>, vector<32x96xbf16>, vector<33x96xf32> -> vector<33x96xf32>
    %58 = vector.extract_strided_slice %57 {offsets = [0, 0], sizes = [33, 16], strides = [1, 1]} : vector<33x96xf32> to vector<33x16xf32>
    %59 = arith.truncf %58 : vector<33x16xf32> to vector<33x16xbf16>
    %60 = vector.extract_strided_slice %57 {offsets = [0, 32], sizes = [33, 16], strides = [1, 1]} : vector<33x96xf32> to vector<33x16xf32>
    %61 = arith.truncf %60 : vector<33x16xf32> to vector<33x16xbf16>
    %62 = vector.extract_strided_slice %57 {offsets = [0, 64], sizes = [33, 16], strides = [1, 1]} : vector<33x96xf32> to vector<33x16xf32>
    %63 = arith.truncf %62 : vector<33x16xf32> to vector<33x16xbf16>
    "tpu.trace_start"() <{level = 10 : i32, message = "qe,ke->qk"}> : () -> ()
    %cst_56 = arith.constant dense<0.000000e+00> : vector<33x33xf32>
    %64 = tpu.matmul %59, %61, %cst_56 {dimension_numbers = #tpu.dot_dimension_numbers<[1], [1], [0], [0], [0, 0, 1, 0], [], []>} : vector<33x16xbf16>, vector<33x16xbf16>, vector<33x33xf32> -> vector<33x33xf32>
    "tpu.trace_stop"() : () -> ()
    %cst_57 = arith.constant 2.500000e-01 : f32
    %65 = vector.broadcast %cst_57 : f32 to vector<33x33xf32>
    %66 = arith.mulf %64, %65 : vector<33x33xf32>
    %cst_58 = arith.constant dense<0xFF800000> : vector<33xf32>
    %67 = vector.multi_reduction <maximumf>, %66, %cst_58 [1] : vector<33x33xf32> to vector<33xf32>
    %68 = vector.shape_cast %67 : vector<33xf32> to vector<33x1xf32>
    %69 = vector.broadcast %68 : vector<33x1xf32> to vector<33x33xf32>
    %70 = arith.subf %66, %69 : vector<33x33xf32>
    %71 = math.exp %70 : vector<33x33xf32>
    %cst_59 = arith.constant dense<0.000000e+00> : vector<33xf32>
    %72 = vector.multi_reduction <add>, %71, %cst_59 [1] : vector<33x33xf32> to vector<33xf32>
    %73 = vector.shape_cast %72 : vector<33xf32> to vector<33x1xf32>
    %74 = tpu.reciprocal %73 {approx = true} : vector<33x1xf32> -> vector<33x1xf32>
    %75 = vector.broadcast %74 : vector<33x1xf32> to vector<33x33xf32>
    %76 = arith.mulf %71, %75 : vector<33x33xf32>
    %77 = arith.truncf %76 : vector<33x33xf32> to vector<33x33xbf16>
    %cst_60 = arith.constant dense<0.000000e+00> : vector<33x16xf32>
    %78 = tpu.matmul %77, %63, %cst_60 {dimension_numbers = #tpu.dot_dimension_numbers<[1], [0], [0], [1], [0, 0, 1, 1], [], []>} : vector<33x33xbf16>, vector<33x16xbf16>, vector<33x16xf32> -> vector<33x16xf32>
    %79 = vector.extract_strided_slice %57 {offsets = [0, 16], sizes = [33, 16], strides = [1, 1]} : vector<33x96xf32> to vector<33x16xf32>
    %80 = arith.truncf %79 : vector<33x16xf32> to vector<33x16xbf16>
    %81 = vector.extract_strided_slice %57 {offsets = [0, 48], sizes = [33, 16], strides = [1, 1]} : vector<33x96xf32> to vector<33x16xf32>
    %82 = arith.truncf %81 : vector<33x16xf32> to vector<33x16xbf16>
    %83 = vector.extract_strided_slice %57 {offsets = [0, 80], sizes = [33, 16], strides = [1, 1]} : vector<33x96xf32> to vector<33x16xf32>
    %84 = arith.truncf %83 : vector<33x16xf32> to vector<33x16xbf16>
    "tpu.trace_start"() <{level = 10 : i32, message = "qe,ke->qk"}> : () -> ()
    %cst_61 = arith.constant dense<0.000000e+00> : vector<33x33xf32>
    %85 = tpu.matmul %80, %82, %cst_61 {dimension_numbers = #tpu.dot_dimension_numbers<[1], [1], [0], [0], [0, 0, 1, 0], [], []>} : vector<33x16xbf16>, vector<33x16xbf16>, vector<33x33xf32> -> vector<33x33xf32>
    "tpu.trace_stop"() : () -> ()
    %cst_62 = arith.constant 2.500000e-01 : f32
    %86 = vector.broadcast %cst_62 : f32 to vector<33x33xf32>
    %87 = arith.mulf %85, %86 : vector<33x33xf32>
    %cst_63 = arith.constant dense<0xFF800000> : vector<33xf32>
    %88 = vector.multi_reduction <maximumf>, %87, %cst_63 [1] : vector<33x33xf32> to vector<33xf32>
    %89 = vector.shape_cast %88 : vector<33xf32> to vector<33x1xf32>
    %90 = vector.broadcast %89 : vector<33x1xf32> to vector<33x33xf32>
    %91 = arith.subf %87, %90 : vector<33x33xf32>
    %92 = math.exp %91 : vector<33x33xf32>
    %cst_64 = arith.constant dense<0.000000e+00> : vector<33xf32>
    %93 = vector.multi_reduction <add>, %92, %cst_64 [1] : vector<33x33xf32> to vector<33xf32>
    %94 = vector.shape_cast %93 : vector<33xf32> to vector<33x1xf32>
    %95 = tpu.reciprocal %94 {approx = true} : vector<33x1xf32> -> vector<33x1xf32>
    %96 = vector.broadcast %95 : vector<33x1xf32> to vector<33x33xf32>
    %97 = arith.mulf %92, %96 : vector<33x33xf32>
    %98 = arith.truncf %97 : vector<33x33xf32> to vector<33x33xbf16>
    %cst_65 = arith.constant dense<0.000000e+00> : vector<33x16xf32>
    %99 = tpu.matmul %98, %84, %cst_65 {dimension_numbers = #tpu.dot_dimension_numbers<[1], [0], [0], [1], [0, 0, 1, 1], [], []>} : vector<33x33xbf16>, vector<33x16xbf16>, vector<33x16xf32> -> vector<33x16xf32>
    %100 = tpu.concatenate %78, %99 in 1 : vector<33x16xf32>, vector<33x16xf32> -> vector<33x32xf32>
    %101 = arith.truncf %100 : vector<33x32xf32> to vector<33x32xbf16>
    %cst_66 = arith.constant dense<0.000000e+00> : vector<33x32xf32>
    %102 = tpu.matmul %101, %11, %cst_66 {dimension_numbers = #tpu.dot_dimension_numbers<[1], [0], [0], [1], [0, 0, 1, 1], [], []>} : vector<33x32xbf16>, vector<32x32xbf16>, vector<33x32xf32> -> vector<33x32xf32>
    %103 = arith.addf %35, %102 : vector<33x32xf32>
    %104 = vector.broadcast %13 : vector<1x32xf32> to vector<33x32xf32>
    %105 = arith.addf %103, %104 : vector<33x32xf32>
    %cst_67 = arith.constant dense<0.000000e+00> : vector<33xf32>
    %106 = vector.multi_reduction <add>, %105, %cst_67 [1] : vector<33x32xf32> to vector<33xf32>
    %107 = vector.shape_cast %106 : vector<33xf32> to vector<33x1xf32>
    %cst_68 = arith.constant 3.200000e+01 : f32
    %108 = vector.broadcast %cst_68 : f32 to vector<33x1xf32>
    %109 = arith.divf %107, %108 : vector<33x1xf32>
    %110 = vector.broadcast %109 : vector<33x1xf32> to vector<33x32xf32>
    %111 = arith.subf %105, %110 : vector<33x32xf32>
    %112 = arith.mulf %111, %111 : vector<33x32xf32>
    %cst_69 = arith.constant dense<0.000000e+00> : vector<33xf32>
    %113 = vector.multi_reduction <add>, %112, %cst_69 [1] : vector<33x32xf32> to vector<33xf32>
    %114 = vector.shape_cast %113 : vector<33xf32> to vector<33x1xf32>
    %cst_70 = arith.constant 3.200000e+01 : f32
    %115 = vector.broadcast %cst_70 : f32 to vector<33x1xf32>
    %116 = arith.divf %114, %115 : vector<33x1xf32>
    %cst_71 = arith.constant 9.99999974E-6 : f32
    %117 = vector.broadcast %cst_71 : f32 to vector<33x1xf32>
    %118 = arith.addf %116, %117 : vector<33x1xf32>
    %119 = math.rsqrt %118 : vector<33x1xf32>
    %120 = vector.broadcast %119 : vector<33x1xf32> to vector<33x32xf32>
    %121 = arith.mulf %111, %120 : vector<33x32xf32>
    %122 = vector.broadcast %15 : vector<1x32xf32> to vector<33x32xf32>
    %123 = arith.mulf %121, %122 : vector<33x32xf32>
    %124 = vector.broadcast %17 : vector<1x32xf32> to vector<33x32xf32>
    %125 = arith.addf %123, %124 : vector<33x32xf32>
    %126 = arith.truncf %125 : vector<33x32xf32> to vector<33x32xbf16>
    %cst_72 = arith.constant dense<0.000000e+00> : vector<33x16xf32>
    %127 = tpu.matmul %126, %19, %cst_72 {dimension_numbers = #tpu.dot_dimension_numbers<[1], [0], [0], [1], [0, 0, 1, 1], [], []>} : vector<33x32xbf16>, vector<32x16xbf16>, vector<33x16xf32> -> vector<33x16xf32>
    %128 = vector.broadcast %21 : vector<1x16xf32> to vector<33x16xf32>
    %129 = arith.addf %127, %128 : vector<33x16xf32>
    %130 = arith.mulf %129, %129 : vector<33x16xf32>
    %131 = arith.mulf %129, %130 : vector<33x16xf32>
    %cst_73 = arith.constant 4.471500e-02 : f32
    %132 = vector.broadcast %cst_73 : f32 to vector<33x16xf32>
    %133 = arith.mulf %132, %131 : vector<33x16xf32>
    %134 = arith.addf %129, %133 : vector<33x16xf32>
    %cst_74 = arith.constant 0.797884583 : f32
    %135 = vector.broadcast %cst_74 : f32 to vector<33x16xf32>
    %136 = arith.mulf %135, %134 : vector<33x16xf32>
    %137 = math.tanh %136 : vector<33x16xf32>
    %cst_75 = arith.constant 1.000000e+00 : f32
    %138 = vector.broadcast %cst_75 : f32 to vector<33x16xf32>
    %139 = arith.addf %138, %137 : vector<33x16xf32>
    %cst_76 = arith.constant 5.000000e-01 : f32
    %140 = vector.broadcast %cst_76 : f32 to vector<33x16xf32>
    %141 = arith.mulf %140, %139 : vector<33x16xf32>
    %142 = arith.mulf %129, %141 : vector<33x16xf32>
    %143 = arith.truncf %142 : vector<33x16xf32> to vector<33x16xbf16>
    %cst_77 = arith.constant dense<0.000000e+00> : vector<33x32xf32>
    %144 = tpu.matmul %143, %23, %cst_77 {dimension_numbers = #tpu.dot_dimension_numbers<[1], [0], [0], [1], [0, 0, 1, 1], [], []>} : vector<33x16xbf16>, vector<16x32xbf16>, vector<33x32xf32> -> vector<33x32xf32>
    %145 = arith.addf %105, %144 : vector<33x32xf32>
    %146 = vector.broadcast %25 : vector<1x32xf32> to vector<33x32xf32>
    %147 = arith.addf %145, %146 : vector<33x32xf32>
    %148 = vector.extract_strided_slice %147 {offsets = [32, 0], sizes = [1, 32], strides = [1, 1]} : vector<33x32xf32> to vector<1x32xf32>
    %149 = arith.truncf %148 : vector<1x32xf32> to vector<1x32xbf16>
    %cst_78 = arith.constant dense<0.000000e+00> : vector<1x16xf32>
    %150 = tpu.matmul %149, %26, %cst_78 {dimension_numbers = #tpu.dot_dimension_numbers<[1], [0], [0], [1], [0, 0, 1, 1], [], []>} : vector<1x32xbf16>, vector<32x16xbf16>, vector<1x16xf32> -> vector<1x16xf32>
    %cst_79 = arith.constant 0.000000e+00 : f32
    %151 = vector.broadcast %cst_79 : f32 to vector<1x16xf32>
    %152 = arith.cmpf oge, %150, %151 : vector<1x16xf32>
    %cst_80 = arith.constant 0.00999999977 : f32
    %153 = vector.broadcast %cst_80 : f32 to vector<1x16xf32>
    %154 = arith.mulf %153, %150 : vector<1x16xf32>
    %155 = arith.select %152, %150, %154 : vector<1x16xi1>, vector<1x16xf32>
    %156 = arith.truncf %155 : vector<1x16xf32> to vector<1x16xbf16>
    %cst_81 = arith.constant dense<0.000000e+00> : vector<1x2xf32>
    %157 = tpu.matmul %156, %27, %cst_81 {dimension_numbers = #tpu.dot_dimension_numbers<[1], [0], [0], [1], [0, 0, 1, 1], [], []>} : vector<1x16xbf16>, vector<16x2xbf16>, vector<1x2xf32> -> vector<1x2xf32>
    %158 = arith.addf %157, %28 : vector<1x2xf32>
    %c1 = arith.constant 1 : index
    %c0_82 = arith.constant 0 : index
    %c0_83 = arith.constant 0 : index
    %159 = vector.load %arg1[%c1, %c0_82, %c0_83] : memref<2x32x32xbf16, #tpu.memory_space<vmem>>, vector<1x32x32xbf16>
    %160 = vector.shape_cast %159 : vector<1x32x32xbf16> to vector<32x32xbf16>
    %c1_84 = arith.constant 1 : index
    %c0_85 = arith.constant 0 : index
    %c0_86 = arith.constant 0 : index
    %161 = vector.load %arg2[%c1_84, %c0_85, %c0_86] : memref<2x32x32xbf16, #tpu.memory_space<vmem>>, vector<1x32x32xbf16>
    %162 = vector.shape_cast %161 : vector<1x32x32xbf16> to vector<32x32xbf16>
    %cst_87 = arith.constant dense<0.000000e+00> : vector<32x32xf32>
    %163 = tpu.matmul %160, %162, %cst_87 {dimension_numbers = #tpu.dot_dimension_numbers<[1], [0], [0], [1], [0, 0, 1, 1], [], []>} : vector<32x32xbf16>, vector<32x32xbf16>, vector<32x32xf32> -> vector<32x32xf32>
    %164 = tpu.concatenate %163, %1 in 0 : vector<32x32xf32>, vector<1x32xf32> -> vector<33x32xf32>
    %165 = arith.addf %164, %3 : vector<33x32xf32>
    %cst_88 = arith.constant dense<0.000000e+00> : vector<33xf32>
    %166 = vector.multi_reduction <add>, %165, %cst_88 [1] : vector<33x32xf32> to vector<33xf32>
    %167 = vector.shape_cast %166 : vector<33xf32> to vector<33x1xf32>
    %cst_89 = arith.constant 3.200000e+01 : f32
    %168 = vector.broadcast %cst_89 : f32 to vector<33x1xf32>
    %169 = arith.divf %167, %168 : vector<33x1xf32>
    %170 = vector.broadcast %169 : vector<33x1xf32> to vector<33x32xf32>
    %171 = arith.subf %165, %170 : vector<33x32xf32>
    %172 = arith.mulf %171, %171 : vector<33x32xf32>
    %cst_90 = arith.constant dense<0.000000e+00> : vector<33xf32>
    %173 = vector.multi_reduction <add>, %172, %cst_90 [1] : vector<33x32xf32> to vector<33xf32>
    %174 = vector.shape_cast %173 : vector<33xf32> to vector<33x1xf32>
    %cst_91 = arith.constant 3.200000e+01 : f32
    %175 = vector.broadcast %cst_91 : f32 to vector<33x1xf32>
    %176 = arith.divf %174, %175 : vector<33x1xf32>
    %cst_92 = arith.constant 9.99999974E-6 : f32
    %177 = vector.broadcast %cst_92 : f32 to vector<33x1xf32>
    %178 = arith.addf %176, %177 : vector<33x1xf32>
    %179 = math.rsqrt %178 : vector<33x1xf32>
    %180 = vector.broadcast %179 : vector<33x1xf32> to vector<33x32xf32>
    %181 = arith.mulf %171, %180 : vector<33x32xf32>
    %182 = vector.broadcast %5 : vector<1x32xf32> to vector<33x32xf32>
    %183 = arith.mulf %181, %182 : vector<33x32xf32>
    %184 = vector.broadcast %7 : vector<1x32xf32> to vector<33x32xf32>
    %185 = arith.addf %183, %184 : vector<33x32xf32>
    %186 = arith.truncf %185 : vector<33x32xf32> to vector<33x32xbf16>
    %cst_93 = arith.constant dense<0.000000e+00> : vector<33x96xf32>
    %187 = tpu.matmul %186, %9, %cst_93 {dimension_numbers = #tpu.dot_dimension_numbers<[1], [0], [0], [1], [0, 0, 1, 1], [], []>} : vector<33x32xbf16>, vector<32x96xbf16>, vector<33x96xf32> -> vector<33x96xf32>
    %188 = vector.extract_strided_slice %187 {offsets = [0, 0], sizes = [33, 16], strides = [1, 1]} : vector<33x96xf32> to vector<33x16xf32>
    %189 = arith.truncf %188 : vector<33x16xf32> to vector<33x16xbf16>
    %190 = vector.extract_strided_slice %187 {offsets = [0, 32], sizes = [33, 16], strides = [1, 1]} : vector<33x96xf32> to vector<33x16xf32>
    %191 = arith.truncf %190 : vector<33x16xf32> to vector<33x16xbf16>
    %192 = vector.extract_strided_slice %187 {offsets = [0, 64], sizes = [33, 16], strides = [1, 1]} : vector<33x96xf32> to vector<33x16xf32>
    %193 = arith.truncf %192 : vector<33x16xf32> to vector<33x16xbf16>
    "tpu.trace_start"() <{level = 10 : i32, message = "qe,ke->qk"}> : () -> ()
    %cst_94 = arith.constant dense<0.000000e+00> : vector<33x33xf32>
    %194 = tpu.matmul %189, %191, %cst_94 {dimension_numbers = #tpu.dot_dimension_numbers<[1], [1], [0], [0], [0, 0, 1, 0], [], []>} : vector<33x16xbf16>, vector<33x16xbf16>, vector<33x33xf32> -> vector<33x33xf32>
    "tpu.trace_stop"() : () -> ()
    %cst_95 = arith.constant 2.500000e-01 : f32
    %195 = vector.broadcast %cst_95 : f32 to vector<33x33xf32>
    %196 = arith.mulf %194, %195 : vector<33x33xf32>
    %cst_96 = arith.constant dense<0xFF800000> : vector<33xf32>
    %197 = vector.multi_reduction <maximumf>, %196, %cst_96 [1] : vector<33x33xf32> to vector<33xf32>
    %198 = vector.shape_cast %197 : vector<33xf32> to vector<33x1xf32>
    %199 = vector.broadcast %198 : vector<33x1xf32> to vector<33x33xf32>
    %200 = arith.subf %196, %199 : vector<33x33xf32>
    %201 = math.exp %200 : vector<33x33xf32>
    %cst_97 = arith.constant dense<0.000000e+00> : vector<33xf32>
    %202 = vector.multi_reduction <add>, %201, %cst_97 [1] : vector<33x33xf32> to vector<33xf32>
    %203 = vector.shape_cast %202 : vector<33xf32> to vector<33x1xf32>
    %204 = tpu.reciprocal %203 {approx = true} : vector<33x1xf32> -> vector<33x1xf32>
    %205 = vector.broadcast %204 : vector<33x1xf32> to vector<33x33xf32>
    %206 = arith.mulf %201, %205 : vector<33x33xf32>
    %207 = arith.truncf %206 : vector<33x33xf32> to vector<33x33xbf16>
    %cst_98 = arith.constant dense<0.000000e+00> : vector<33x16xf32>
    %208 = tpu.matmul %207, %193, %cst_98 {dimension_numbers = #tpu.dot_dimension_numbers<[1], [0], [0], [1], [0, 0, 1, 1], [], []>} : vector<33x33xbf16>, vector<33x16xbf16>, vector<33x16xf32> -> vector<33x16xf32>
    %209 = vector.extract_strided_slice %187 {offsets = [0, 16], sizes = [33, 16], strides = [1, 1]} : vector<33x96xf32> to vector<33x16xf32>
    %210 = arith.truncf %209 : vector<33x16xf32> to vector<33x16xbf16>
    %211 = vector.extract_strided_slice %187 {offsets = [0, 48], sizes = [33, 16], strides = [1, 1]} : vector<33x96xf32> to vector<33x16xf32>
    %212 = arith.truncf %211 : vector<33x16xf32> to vector<33x16xbf16>
    %213 = vector.extract_strided_slice %187 {offsets = [0, 80], sizes = [33, 16], strides = [1, 1]} : vector<33x96xf32> to vector<33x16xf32>
    %214 = arith.truncf %213 : vector<33x16xf32> to vector<33x16xbf16>
    "tpu.trace_start"() <{level = 10 : i32, message = "qe,ke->qk"}> : () -> ()
    %cst_99 = arith.constant dense<0.000000e+00> : vector<33x33xf32>
    %215 = tpu.matmul %210, %212, %cst_99 {dimension_numbers = #tpu.dot_dimension_numbers<[1], [1], [0], [0], [0, 0, 1, 0], [], []>} : vector<33x16xbf16>, vector<33x16xbf16>, vector<33x33xf32> -> vector<33x33xf32>
    "tpu.trace_stop"() : () -> ()
    %cst_100 = arith.constant 2.500000e-01 : f32
    %216 = vector.broadcast %cst_100 : f32 to vector<33x33xf32>
    %217 = arith.mulf %215, %216 : vector<33x33xf32>
    %cst_101 = arith.constant dense<0xFF800000> : vector<33xf32>
    %218 = vector.multi_reduction <maximumf>, %217, %cst_101 [1] : vector<33x33xf32> to vector<33xf32>
    %219 = vector.shape_cast %218 : vector<33xf32> to vector<33x1xf32>
    %220 = vector.broadcast %219 : vector<33x1xf32> to vector<33x33xf32>
    %221 = arith.subf %217, %220 : vector<33x33xf32>
    %222 = math.exp %221 : vector<33x33xf32>
    %cst_102 = arith.constant dense<0.000000e+00> : vector<33xf32>
    %223 = vector.multi_reduction <add>, %222, %cst_102 [1] : vector<33x33xf32> to vector<33xf32>
    %224 = vector.shape_cast %223 : vector<33xf32> to vector<33x1xf32>
    %225 = tpu.reciprocal %224 {approx = true} : vector<33x1xf32> -> vector<33x1xf32>
    %226 = vector.broadcast %225 : vector<33x1xf32> to vector<33x33xf32>
    %227 = arith.mulf %222, %226 : vector<33x33xf32>
    %228 = arith.truncf %227 : vector<33x33xf32> to vector<33x33xbf16>
    %cst_103 = arith.constant dense<0.000000e+00> : vector<33x16xf32>
    %229 = tpu.matmul %228, %214, %cst_103 {dimension_numbers = #tpu.dot_dimension_numbers<[1], [0], [0], [1], [0, 0, 1, 1], [], []>} : vector<33x33xbf16>, vector<33x16xbf16>, vector<33x16xf32> -> vector<33x16xf32>
    %230 = tpu.concatenate %208, %229 in 1 : vector<33x16xf32>, vector<33x16xf32> -> vector<33x32xf32>
    %231 = arith.truncf %230 : vector<33x32xf32> to vector<33x32xbf16>
    %cst_104 = arith.constant dense<0.000000e+00> : vector<33x32xf32>
    %232 = tpu.matmul %231, %11, %cst_104 {dimension_numbers = #tpu.dot_dimension_numbers<[1], [0], [0], [1], [0, 0, 1, 1], [], []>} : vector<33x32xbf16>, vector<32x32xbf16>, vector<33x32xf32> -> vector<33x32xf32>
    %233 = arith.addf %165, %232 : vector<33x32xf32>
    %234 = vector.broadcast %13 : vector<1x32xf32> to vector<33x32xf32>
    %235 = arith.addf %233, %234 : vector<33x32xf32>
    %cst_105 = arith.constant dense<0.000000e+00> : vector<33xf32>
    %236 = vector.multi_reduction <add>, %235, %cst_105 [1] : vector<33x32xf32> to vector<33xf32>
    %237 = vector.shape_cast %236 : vector<33xf32> to vector<33x1xf32>
    %cst_106 = arith.constant 3.200000e+01 : f32
    %238 = vector.broadcast %cst_106 : f32 to vector<33x1xf32>
    %239 = arith.divf %237, %238 : vector<33x1xf32>
    %240 = vector.broadcast %239 : vector<33x1xf32> to vector<33x32xf32>
    %241 = arith.subf %235, %240 : vector<33x32xf32>
    %242 = arith.mulf %241, %241 : vector<33x32xf32>
    %cst_107 = arith.constant dense<0.000000e+00> : vector<33xf32>
    %243 = vector.multi_reduction <add>, %242, %cst_107 [1] : vector<33x32xf32> to vector<33xf32>
    %244 = vector.shape_cast %243 : vector<33xf32> to vector<33x1xf32>
    %cst_108 = arith.constant 3.200000e+01 : f32
    %245 = vector.broadcast %cst_108 : f32 to vector<33x1xf32>
    %246 = arith.divf %244, %245 : vector<33x1xf32>
    %cst_109 = arith.constant 9.99999974E-6 : f32
    %247 = vector.broadcast %cst_109 : f32 to vector<33x1xf32>
    %248 = arith.addf %246, %247 : vector<33x1xf32>
    %249 = math.rsqrt %248 : vector<33x1xf32>
    %250 = vector.broadcast %249 : vector<33x1xf32> to vector<33x32xf32>
    %251 = arith.mulf %241, %250 : vector<33x32xf32>
    %252 = vector.broadcast %15 : vector<1x32xf32> to vector<33x32xf32>
    %253 = arith.mulf %251, %252 : vector<33x32xf32>
    %254 = vector.broadcast %17 : vector<1x32xf32> to vector<33x32xf32>
    %255 = arith.addf %253, %254 : vector<33x32xf32>
    %256 = arith.truncf %255 : vector<33x32xf32> to vector<33x32xbf16>
    %cst_110 = arith.constant dense<0.000000e+00> : vector<33x16xf32>
    %257 = tpu.matmul %256, %19, %cst_110 {dimension_numbers = #tpu.dot_dimension_numbers<[1], [0], [0], [1], [0, 0, 1, 1], [], []>} : vector<33x32xbf16>, vector<32x16xbf16>, vector<33x16xf32> -> vector<33x16xf32>
    %258 = vector.broadcast %21 : vector<1x16xf32> to vector<33x16xf32>
    %259 = arith.addf %257, %258 : vector<33x16xf32>
    %260 = arith.mulf %259, %259 : vector<33x16xf32>
    %261 = arith.mulf %259, %260 : vector<33x16xf32>
    %cst_111 = arith.constant 4.471500e-02 : f32
    %262 = vector.broadcast %cst_111 : f32 to vector<33x16xf32>
    %263 = arith.mulf %262, %261 : vector<33x16xf32>
    %264 = arith.addf %259, %263 : vector<33x16xf32>
    %cst_112 = arith.constant 0.797884583 : f32
    %265 = vector.broadcast %cst_112 : f32 to vector<33x16xf32>
    %266 = arith.mulf %265, %264 : vector<33x16xf32>
    %267 = math.tanh %266 : vector<33x16xf32>
    %cst_113 = arith.constant 1.000000e+00 : f32
    %268 = vector.broadcast %cst_113 : f32 to vector<33x16xf32>
    %269 = arith.addf %268, %267 : vector<33x16xf32>
    %cst_114 = arith.constant 5.000000e-01 : f32
    %270 = vector.broadcast %cst_114 : f32 to vector<33x16xf32>
    %271 = arith.mulf %270, %269 : vector<33x16xf32>
    %272 = arith.mulf %259, %271 : vector<33x16xf32>
    %273 = arith.truncf %272 : vector<33x16xf32> to vector<33x16xbf16>
    %cst_115 = arith.constant dense<0.000000e+00> : vector<33x32xf32>
    %274 = tpu.matmul %273, %23, %cst_115 {dimension_numbers = #tpu.dot_dimension_numbers<[1], [0], [0], [1], [0, 0, 1, 1], [], []>} : vector<33x16xbf16>, vector<16x32xbf16>, vector<33x32xf32> -> vector<33x32xf32>
    %275 = arith.addf %235, %274 : vector<33x32xf32>
    %276 = vector.broadcast %25 : vector<1x32xf32> to vector<33x32xf32>
    %277 = arith.addf %275, %276 : vector<33x32xf32>
    %278 = vector.extract_strided_slice %277 {offsets = [32, 0], sizes = [1, 32], strides = [1, 1]} : vector<33x32xf32> to vector<1x32xf32>
    %279 = arith.truncf %278 : vector<1x32xf32> to vector<1x32xbf16>
    %cst_116 = arith.constant dense<0.000000e+00> : vector<1x16xf32>
    %280 = tpu.matmul %279, %26, %cst_116 {dimension_numbers = #tpu.dot_dimension_numbers<[1], [0], [0], [1], [0, 0, 1, 1], [], []>} : vector<1x32xbf16>, vector<32x16xbf16>, vector<1x16xf32> -> vector<1x16xf32>
    %cst_117 = arith.constant 0.000000e+00 : f32
    %281 = vector.broadcast %cst_117 : f32 to vector<1x16xf32>
    %282 = arith.cmpf oge, %280, %281 : vector<1x16xf32>
    %cst_118 = arith.constant 0.00999999977 : f32
    %283 = vector.broadcast %cst_118 : f32 to vector<1x16xf32>
    %284 = arith.mulf %283, %280 : vector<1x16xf32>
    %285 = arith.select %282, %280, %284 : vector<1x16xi1>, vector<1x16xf32>
    %286 = arith.truncf %285 : vector<1x16xf32> to vector<1x16xbf16>
    %cst_119 = arith.constant dense<0.000000e+00> : vector<1x2xf32>
    %287 = tpu.matmul %286, %27, %cst_119 {dimension_numbers = #tpu.dot_dimension_numbers<[1], [0], [0], [1], [0, 0, 1, 1], [], []>} : vector<1x16xbf16>, vector<16x2xbf16>, vector<1x2xf32> -> vector<1x2xf32>
    %288 = arith.addf %287, %28 : vector<1x2xf32>
    %289 = vector.shape_cast %158 : vector<1x2xf32> to vector<1x1x2xf32>
    %290 = vector.shape_cast %288 : vector<1x2xf32> to vector<1x1x2xf32>
    %291 = tpu.concatenate %289, %290 in 0 : vector<1x1x2xf32>, vector<1x1x2xf32> -> vector<2x1x2xf32>
    %c0_120 = arith.constant 0 : index
    %c0_121 = arith.constant 0 : index
    %c0_122 = arith.constant 0 : index
    %292 = vector.load %arg19[%c0_120, %c0_121, %c0_122] : memref<2x1x2xf32, #tpu.memory_space<vmem>>, vector<2x1x2xf32>
    tpu.vector_store %arg19[%c0_120, %c0_121, %c0_122], %291 {strides = array<i32>} : memref<2x1x2xf32, #tpu.memory_space<vmem>>, vector<2x1x2xf32>,
    return
  }
  func.func @transform_0(%arg0: i32) -> (i32, i32, i32) {
    %c0_i32 = arith.constant 0 : i32
    %c0_i32_0 = arith.constant 0 : i32
    %c0_i32_1 = arith.constant 0 : i32
    return %arg0, %c0_i32, %c0_i32_0 : i32, i32, i32
  }
  func.func @transform_1(%arg0: i32) -> (i32, i32, i32) {
    %c0_i32 = arith.constant 0 : i32
    %c0_i32_0 = arith.constant 0 : i32
    %c0_i32_1 = arith.constant 0 : i32
    return %arg0, %c0_i32, %c0_i32_0 : i32, i32, i32
  }
  func.func @transform_2(%arg0: i32) -> (i32, i32, i32) {
    %c0_i32 = arith.constant 0 : i32
    %c0_i32_0 = arith.constant 0 : i32
    %c0_i32_1 = arith.constant 0 : i32
    %c0_i32_2 = arith.constant 0 : i32
    return %c0_i32, %c0_i32_0, %c0_i32_1 : i32, i32, i32
  }
  func.func @transform_3(%arg0: i32) -> (i32, i32, i32) {
    %c0_i32 = arith.constant 0 : i32
    %c0_i32_0 = arith.constant 0 : i32
    %c0_i32_1 = arith.constant 0 : i32
    %c0_i32_2 = arith.constant 0 : i32
    return %c0_i32, %c0_i32_0, %c0_i32_1 : i32, i32, i32
  }
  func.func @transform_4(%arg0: i32) -> (i32, i32, i32) {
    %c0_i32 = arith.constant 0 : i32
    %c0_i32_0 = arith.constant 0 : i32
    %c0_i32_1 = arith.constant 0 : i32
    %c0_i32_2 = arith.constant 0 : i32
    return %c0_i32, %c0_i32_0, %c0_i32_1 : i32, i32, i32
  }
  func.func @transform_5(%arg0: i32) -> (i32, i32, i32) {
    %c0_i32 = arith.constant 0 : i32
    %c0_i32_0 = arith.constant 0 : i32
    %c0_i32_1 = arith.constant 0 : i32
    %c0_i32_2 = arith.constant 0 : i32
    return %c0_i32, %c0_i32_0, %c0_i32_1 : i32, i32, i32
  }
  func.func @transform_6(%arg0: i32) -> (i32, i32, i32) {
    %c0_i32 = arith.constant 0 : i32
    %c0_i32_0 = arith.constant 0 : i32
    %c0_i32_1 = arith.constant 0 : i32
    %c0_i32_2 = arith.constant 0 : i32
    return %c0_i32, %c0_i32_0, %c0_i32_1 : i32, i32, i32
  }
  func.func @transform_7(%arg0: i32) -> (i32, i32, i32) {
    %c0_i32 = arith.constant 0 : i32
    %c0_i32_0 = arith.constant 0 : i32
    %c0_i32_1 = arith.constant 0 : i32
    %c0_i32_2 = arith.constant 0 : i32
    return %c0_i32, %c0_i32_0, %c0_i32_1 : i32, i32, i32
  }
  func.func @transform_8(%arg0: i32) -> (i32, i32, i32) {
    %c0_i32 = arith.constant 0 : i32
    %c0_i32_0 = arith.constant 0 : i32
    %c0_i32_1 = arith.constant 0 : i32
    %c0_i32_2 = arith.constant 0 : i32
    return %c0_i32, %c0_i32_0, %c0_i32_1 : i32, i32, i32
  }
  func.func @transform_9(%arg0: i32) -> (i32, i32, i32) {
    %c0_i32 = arith.constant 0 : i32
    %c0_i32_0 = arith.constant 0 : i32
    %c0_i32_1 = arith.constant 0 : i32
    %c0_i32_2 = arith.constant 0 : i32
    return %c0_i32, %c0_i32_0, %c0_i32_1 : i32, i32, i32
  }
  func.func @transform_10(%arg0: i32) -> (i32, i32, i32) {
    %c0_i32 = arith.constant 0 : i32
    %c0_i32_0 = arith.constant 0 : i32
    %c0_i32_1 = arith.constant 0 : i32
    %c0_i32_2 = arith.constant 0 : i32
    return %c0_i32, %c0_i32_0, %c0_i32_1 : i32, i32, i32
  }
  func.func @transform_11(%arg0: i32) -> (i32, i32, i32) {
    %c0_i32 = arith.constant 0 : i32
    %c0_i32_0 = arith.constant 0 : i32
    %c0_i32_1 = arith.constant 0 : i32
    %c0_i32_2 = arith.constant 0 : i32
    return %c0_i32, %c0_i32_0, %c0_i32_1 : i32, i32, i32
  }
  func.func @transform_12(%arg0: i32) -> (i32, i32, i32) {
    %c0_i32 = arith.constant 0 : i32
    %c0_i32_0 = arith.constant 0 : i32
    %c0_i32_1 = arith.constant 0 : i32
    %c0_i32_2 = arith.constant 0 : i32
    return %c0_i32, %c0_i32_0, %c0_i32_1 : i32, i32, i32
  }
  func.func @transform_13(%arg0: i32) -> (i32, i32, i32) {
    %c0_i32 = arith.constant 0 : i32
    %c0_i32_0 = arith.constant 0 : i32
    %c0_i32_1 = arith.constant 0 : i32
    %c0_i32_2 = arith.constant 0 : i32
    return %c0_i32, %c0_i32_0, %c0_i32_1 : i32, i32, i32
  }
  func.func @transform_14(%arg0: i32) -> (i32, i32, i32) {
    %c0_i32 = arith.constant 0 : i32
    %c0_i32_0 = arith.constant 0 : i32
    %c0_i32_1 = arith.constant 0 : i32
    %c0_i32_2 = arith.constant 0 : i32
    return %c0_i32, %c0_i32_0, %c0_i32_1 : i32, i32, i32
  }
  func.func @transform_15(%arg0: i32) -> (i32, i32) {
    %c0_i32 = arith.constant 0 : i32
    %c0_i32_0 = arith.constant 0 : i32
    %c0_i32_1 = arith.constant 0 : i32
    return %c0_i32, %c0_i32_0 : i32, i32
  }
  func.func @transform_16(%arg0: i32) -> (i32, i32) {
    %c0_i32 = arith.constant 0 : i32
    %c0_i32_0 = arith.constant 0 : i32
    %c0_i32_1 = arith.constant 0 : i32
    return %c0_i32, %c0_i32_0 : i32, i32
  }
  func.func @transform_17(%arg0: i32) -> (i32, i32) {
    %c0_i32 = arith.constant 0 : i32
    %c0_i32_0 = arith.constant 0 : i32
    %c0_i32_1 = arith.constant 0 : i32
    return %c0_i32, %c0_i32_0 : i32, i32
  }
  func.func @transform_18(%arg0: i32) -> (i32, i32, i32) {
    %c0_i32 = arith.constant 0 : i32
    %c0_i32_0 = arith.constant 0 : i32
    %c0_i32_1 = arith.constant 0 : i32
    return %arg0, %c0_i32, %c0_i32_0 : i32, i32, i32
  }
}

</mosaic_0001>

<bundles_post_ra>
// kernel: tpu_custom_call.1
= control target key start
LH: loop header
LB: loop body
LE: loop exit
PB: predicated region body
PF: predicated region fallthrough
CT: control target
= control target key end

     0   :  { %s4181_s0 = inlined_call_operand.vmem [shape: bf16[2,32,32], index: 0, kind: input, shape index: {}]   ;;  %s4182_s1 = inlined_call_operand.vmem [shape: bf16[2,32,32], index: 1, kind: input, shape index: {}]   ;;  %s4183_s2 = inlined_call_operand.hbm [shape: f32[1,1,32], index: 2, kind: input, shape index: {}]   ;;  %s4184_s3 = inlined_call_operand.vmem [shape: f32[1,33,32], index: 3, kind: input, shape index: {}]   ;;  %s4185_s4 = inlined_call_operand.hbm [shape: f32[1,1,32], index: 4, kind: input, shape index: {}]   ;;  %s4186_s5 = inlined_call_operand.vmem [shape: f32[1,1,32], index: 5, kind: input, shape index: {}]   ;;  %s4187_s6 = inlined_call_operand.vmem [shape: bf16[1,32,96], index: 6, kind: input, shape index: {}]   ;;  %s4188_s7 = inlined_call_operand.vmem [shape: bf16[1,32,32], index: 7, kind: input, shape index: {}]   ;;  %s4189_s8 = inlined_call_operand.vmem [shape: f32[1,1,32], index: 8, kind: input, shape index: {}]   ;;  %s4190_s9 = inlined_call_operand.vmem [shape: f32[1,1,32], index: 9, kind: input, shape index: {}]   ;;  %s4191_s10 = inlined_call_operand.vmem [shape: f32[1,1,32], index: 10, kind: input, shape index: {}]   ;;  %s4192_s11 = inlined_call_operand.vmem [shape: bf16[1,32,16], index: 11, kind: input, shape index: {}]   ;;  %s4193_s12 = inlined_call_operand.vmem [shape: f32[1,1,16], index: 12, kind: input, shape index: {}]   ;;  %s4194_s13 = inlined_call_operand.vmem [shape: bf16[1,16,32], index: 13, kind: input, shape index: {}]   ;;  %s4195_s14 = inlined_call_operand.vmem [shape: f32[1,1,32], index: 14, kind: input, shape index: {}]   ;;  %s4196_s15 = inlined_call_operand.vmem [shape: bf16[32,16], index: 15, kind: input, shape index: {}]   ;;  %s4197_s16 = inlined_call_operand.vmem [shape: bf16[16,2], index: 16, kind: input, shape index: {}]   ;;  %s4198_s17 = inlined_call_operand.vmem [shape: f32[1,2], index: 17, kind: input, shape index: {}]   ;;  %s4199_s18 = inlined_call_operand.hbm [shape: f32[2,1,2], index: 18, kind: output, shape index: {}]  }
   0x1   :  { %4203 = sst [smem:[#allocation11_spill]] %s4181_s0 }
   0x2   :  { %4204 = sst [smem:[#allocation12_spill]] %s4182_s1 }
   0x3   :  { %4205 = sst [smem:[#allocation13_spill]] %s4183_s2 }
   0x4   :  { %23 = vsyncpa [#allocation3], 0 }
   0x5   :  { %24 = vsyncpa [#allocation6], 0 }
   0x6   :  { %25 = vsyncpa [#allocation4], 0  ;;  %s3281_s27 = smov [#allocation2]   ;;  %s3282_s29 = smov [#allocation5]  }
   0x7   :  { %s36_s28 = sshll.u32 %s3281_s27, 4  ;;  %s48_s30 = sshll.u32 %s3282_s29, 4  ;;  %s37_s28 = int_to_ptr.vmem [resolvable:$true] %s36_s28  ;;  %s49_s30 = int_to_ptr.vmem [resolvable:$true] %s48_s30 }
   0x8   :  { %s4206_s1 = sld [smem:[#allocation13_spill]] }
   0xe   :  { %s3209_s20 = scalar_lea.hbm %s4206_s1, 16 }
   0xf   :  { %p3210_p0 = scmp.ne.s32.totalorder %s4206_s1, %s3209_s20  ;;  %p3213_p1 = scmp.lt.u32.totalorder %s3209_s20, %s4206_s1 }
  0x11   :  { %p3215_p2 = pnand %p3213_p1, %p3210_p0 }
  0x13   :  { %3218 = shalt.err (!%p3215_p2)
}
  0x14   :  { %s3219_s24 = scalar_lea.vmem %s37_s28, 16  ;;  %s3223_s25 = scalar_lea.vmem %s37_s28, 32 }
  0x15   :  { %p3220_p3 = scmp.ne.s32.totalorder %s37_s28, %s3219_s24  ;;  %p3224_p4 = scmp.lt.s32.totalorder %s37_s28, %s37_s28 }
  0x16   :  { %p3225_p5 = scmp.lt.s32.totalorder %s3223_s25, %s3219_s24 }
  0x18   :  { %p3226_p6 = por %p3225_p5, %p3224_p4 }
  0x1a   :  { %p3227_p7 = pnand %p3226_p6, %p3220_p3 }
  0x1c   :  { %3230 = shalt.err (!%p3227_p7)
}
  0x1d   :  { %39 = dma.hbm_to_vmem [thread:$0]  %s4206_s1, 16, %s37_s28, [#allocation3]  }
  0x1e   :  { %s3231_s19 = scalar_lea.hbm %s4185_s4, 16 }
  0x1f   :  { %p3232_p8 = scmp.ne.s32.totalorder %s4185_s4, %s3231_s19  ;;  %p3235_p9 = scmp.lt.u32.totalorder %s3231_s19, %s4185_s4 }
  0x21   :  { %p3237_p10 = pnand %p3235_p9, %p3232_p8 }
  0x23   :  { %3240 = shalt.err (!%p3237_p10)
}
  0x24   :  { %s3241_s23 = scalar_lea.vmem %s49_s30, 16  ;;  %s3245_s24 = scalar_lea.vmem %s49_s30, 32 }
  0x25   :  { %p3242_p11 = scmp.ne.s32.totalorder %s49_s30, %s3241_s23  ;;  %p3246_p12 = scmp.lt.s32.totalorder %s49_s30, %s49_s30 }
  0x26   :  { %p3247_p13 = scmp.lt.s32.totalorder %s3245_s24, %s3241_s23 }
  0x28   :  { %p3248_p0 = por %p3247_p13, %p3246_p12 }
  0x2a   :  { %p3249_p1 = pnand %p3248_p0, %p3242_p11 }
  0x2c   :  { %3252 = shalt.err (!%p3249_p1)
}
  0x2d   :  { %51 = dma.hbm_to_vmem [thread:$0]  %s4185_s4, 16, %s49_s30, [#allocation6]  }
  0x2e   :  { %3275 = dma.done.wait [#allocation3], 16  }
  0x2f   :  { %3276 = vsyncadd [#allocation3], 4294967280 }
  0x30   :  { %3277 = dma.done.wait [#allocation6], 16  }
  0x31   :  { %3278 = vsyncadd [#allocation6], 4294967280  ;;  %s4207_s27 = sld [smem:[#allocation12_spill]]  ;;  %vm149_vm0 = vcmask 261120   ;;  %s4208_s20 = sld [smem:[#allocation11_spill]]  ;;  %v88_v4 = vld [vmem:[%s4184_s3 + $0x10] sm:$0xff] }
  0x32   :  { %v86_v5 = vld [vmem:[%s4184_s3] sm:$0xff]  ;;  %v89_v7 = vld [vmem:[%s4184_s3 + $0x18] sm:$0xff]  ;;  %v87_v10 = vld [vmem:[%s4184_s3 + $0x8] sm:$0xff]  ;;  %vm222_vm1 = vcmask 253952   ;;  %v3283_v50 = vmov 0.0   ;;  %vm3284_vm2 = vmmov 0  }
  0x33   :  { %v85_v16 = vld [vmem:[#allocation2] sm:$0x1]  ;;  %2696 = vmatprep.subr.bf16.mxu1 %v3283_v50  ;;  %2700 = vmatprep.mubr.msk.bf16.mxu1 %vm3284_vm2, %v3283_v50  ;;  %v3038_v51 = vld [vmem:[%s4187_s6 + $0x8] sm:$0xff]   ;;  %s3285_s23 = smov 96   ;;  %s3286_s24 = smov 80   ;;  %vm391_vm3 = vcmask 130048  }
  0x34   :  { %v90_v17 = vld [vmem:[%s4184_s3 + $0x20] sm:$0x1]  ;;  %s3287_s28 = smov 112   ;;  %vm471_vm4 = vcmask 269312   ;;  %vm484_vm5 = vcmask 262144   ;;  %s3288_s1 = smov 64  }
  0x35   :  { %v3454_v20 = vadd.f32 %v90_v17, %v85_v16  ;;  %v3037_v49 = vld [vmem:[%s4187_s6] sm:$0xff]   ;;  %s3289_s25 = smov 48   ;;  %vm548_vm6 = vcmask 1040384   ;;  %s3291_s21 = smov 16   ;;  %vm2474_vm8 = vcmask 8192  }
  0x36   :  { %2697 = vmatpush3.bf16.msra.mxu1 %v3037_v49 }
  0x37   :  { %v3033_v0 = vld [vmem:[%s4207_s27] sm:$0xff]   ;;  %v3034_v1 = vld [vmem:[%s4207_s27 + $0x8] sm:$0xff]   ;;  %v223_v23 = vsel %vm222_vm1, %v3454_v20, 0.0  ;;  %2698 = vmatprep.subr.bf16.mxu1 %v3283_v50 }
  0x38   :  { %2688 = vmatprep.subr.bf16.mxu0 %v3033_v0  ;;  %v3035_v2 = vld [vmem:[%s4208_s20] sm:$0xff]   ;;  %v3036_v3 = vld [vmem:[%s4208_s20 + $0x8] sm:$0xff]  }
  0x39   :  { %2689 = vmatpush3.bf16.msra.mxu0 %v3033_v0  ;;  %2692 = vmatprep.mubr.msk.bf16.mxu0 %vm149_vm0, %v3035_v2 }
  0x3a   :  { %2690 = vmatprep.subr.bf16.mxu0 %v3034_v1  ;;  %2699 = vmatpush3.bf16.msra.mxu1 %v3038_v51 }
  0x3b   :  { %2730 = vmatprep.subr.bf16.mxu1 %v3283_v50 }
  0x3d   :  { %2691 = vmatpush3.bf16.msra.mxu0 %v3034_v1 }
  0x3e   :  { %2712 = vmatprep.subr.bf16.mxu0 %v3283_v50 }
  0x40   :  { %2693 = vmatmul.mubr.msk.bf16.vlgmr.msra.gmra.mrb[0].mxu0 %vm149_vm0, %v3036_v3 }
  0x41   :  { %2718 = vmatprep.mubr.msk.bf16.mxu0 %vm3284_vm2, %v3283_v50 }
 0x113   :  { %v2694_v6 = vpop.f32.mrb[0].mxu0 }
 0x114   :  { %v3436_v8 = vadd.f32 %v2694_v6, %v88_v4  ;;  %v190_v9 = vpop.f32.mrb[1].mxu0 }
 0x115   :  { %v3441_v11 = vadd.f32 %v190_v9, %v86_v5  ;;  %v2695_v12 = vpop.f32.mrb[2].mxu0  ;;  %v2501_v5 = vld [vmem:[#allocation5] ss:$0 sm:$0xff] }
 0x116   :  { %v3443_v13 = vadd.f32 %v2695_v12, %v89_v7  ;;  %v193_v14 = vpop.f32.mrb[3].mxu0  ;;  %v216_v15 = vsel %vm149_vm0, %v3436_v8, 0.0  ;;  %v2502_v12 = vld [vmem:[%s4186_s5] ss:$0 sm:$0xff] }
 0x117   :  { %v3450_v18 = vadd.f32 %v193_v14, %v87_v10  ;;  %217 = vadd.xlane.f32.xlu1 %v216_v15  ;;  %v210_v19 = vsel %vm149_vm0, %v3441_v11, 0.0 }
 0x118   :  { %211 = vadd.xlane.f32.xlu0 %v210_v19  ;;  %v219_v21 = vsel %vm149_vm0, %v3443_v13, 0.0 }
 0x119   :  { %v213_v22 = vsel %vm149_vm0, %v3450_v18, 0.0 }
 0x11b   :  { %220 = vadd.xlane.f32.xlu1 %v219_v21 }
 0x11c   :  { %214 = vadd.xlane.f32.xlu0 %v213_v22 }
 0x120   :  { %224 = vadd.xlane.f32.xlu0 %v223_v23 }
 0x1a4   :  { %v218_v24 = vpop.xlane.xlu1 %217 }
 0x1a5   :  { %v229_v25 = vmul.f32 0.03125, %v218_v24  ;;  %v212_v26 = vpop.xlane.xlu0 %211 }
 0x1a6   :  { %v227_v27 = vmul.f32 0.03125, %v212_v26 }
 0x1a7   :  { %v3463_v28 = vsub.f32 %v3436_v8, %v229_v25 }
 0x1a8   :  { %v232_v29 = vsub.f32 %v3441_v11, %v227_v27  ;;  %v221_v30 = vpop.xlane.xlu1 %220 }
 0x1a9   :  { %v230_v31 = vmul.f32 0.03125, %v221_v30  ;;  %v215_v32 = vpop.xlane.xlu0 %214  ;;  %v239_v38 = vmul.f32 %v3463_v28, %v3463_v28 }
 0x1aa   :  { %v228_v33 = vmul.f32 0.03125, %v215_v32  ;;  %v237_v34 = vmul.f32 %v232_v29, %v232_v29 }
 0x1ab   :  { %v3467_v35 = vsub.f32 %v3443_v13, %v230_v31  ;;  %v248_v43 = vsel %vm149_vm0, %v239_v38, 0.0 }
 0x1ac   :  { %v233_v36 = vsub.f32 %v3450_v18, %v228_v33  ;;  %v242_v37 = vsel %vm149_vm0, %v237_v34, 0.0 }
 0x1ad   :  { %243 = vadd.xlane.f32.xlu1 %v242_v37  ;;  %v225_v39 = vpop.xlane.xlu0 %224  ;;  %v240_v45 = vmul.f32 %v3467_v35, %v3467_v35 }
 0x1ae   :  { %v231_v40 = vmul.f32 0.03125, %v225_v39  ;;  %v238_v41 = vmul.f32 %v233_v36, %v233_v36 }
 0x1af   :  { %v251_v47 = vsel %vm149_vm0, %v240_v45, 0.0 }
 0x1b0   :  { %v3474_v42 = vsub.f32 %v3454_v20, %v231_v40  ;;  %v245_v44 = vsel %vm149_vm0, %v238_v41, 0.0 }
 0x1b1   :  { %249 = vadd.xlane.f32.xlu1 %v248_v43  ;;  %246 = vadd.xlane.f32.xlu0 %v245_v44 }
 0x1b2   :  { %v241_v46 = vmul.f32 %v3474_v42, %v3474_v42 }
 0x1b4   :  { %v254_v48 = vsel %vm222_vm1, %v241_v46, 0.0 }
 0x1b5   :  { %252 = vadd.xlane.f32.xlu0 %v251_v47  ;;  %255 = vadd.xlane.f32.xlu1 %v254_v48 }
 0x23a   :  { %v244_v52 = vpop.xlane.xlu1 %243 }
 0x23b   :  { %v257_v53 = vmul.f32 0.03125, %v244_v52 }
 0x23d   :  { %v262_v54 = vadd.f32 1e-05, %v257_v53 }
 0x23e   :  { %v250_v55 = vpop.xlane.xlu1 %249  ;;  %v247_v56 = vpop.xlane.xlu0 %246 }
 0x23f   :  { %3051 = vrsqrt.f32 %v262_v54  ;;  %v259_v57 = vmul.f32 0.03125, %v250_v55  ;;  %v258_v58 = vmul.f32 0.03125, %v247_v56 }
 0x241   :  { %v263_v59 = vadd.f32 1e-05, %v258_v58  ;;  %v264_v60 = vadd.f32 1e-05, %v259_v57 }
 0x242   :  { %v256_v61 = vpop.xlane.xlu1 %255  ;;  %v253_v62 = vpop.xlane.xlu0 %252 }
 0x243   :  { %v260_v63 = vmul.f32 0.03125, %v253_v62  ;;  %3053 = vrsqrt.f32 %v263_v59  ;;  %v261_v0 = vmul.f32 0.03125, %v256_v61 }
 0x244   :  { %3055 = vrsqrt.f32 %v264_v60 }
 0x245   :  { %v265_v1 = vadd.f32 1e-05, %v260_v63  ;;  %v266_v2 = vadd.f32 1e-05, %v261_v0 }
 0x247   :  { %3057 = vrsqrt.f32 %v265_v1 }
 0x248   :  { %3059 = vrsqrt.f32 %v266_v2 }
 0x249   :  { %v3052_v3 = vpop.eup %3051 }
 0x24a   :  { %v272_v4 = vmul.f32 %v3052_v3, %v232_v29 }
 0x24c   :  { %v283_v9 = vmul.f32 %v2501_v5, %v272_v4 }
 0x24d   :  { %v3054_v6 = vpop.eup %3053 }
 0x24e   :  { %v273_v7 = vmul.f32 %v3054_v6, %v233_v36  ;;  %v3056_v10 = vpop.eup %3055  ;;  %v294_v16 = vadd.f32 %v2502_v12, %v283_v9 }
 0x24f   :  { %v274_v19 = vmul.f32 %v3056_v10, %v3463_v28 }
 0x250   :  { %v284_v14 = vmul.f32 %v2501_v5, %v273_v7 }
 0x251   :  { %v3058_v15 = vpop.eup %3057  ;;  %v285_v25 = vmul.f32 %v2501_v5, %v274_v19 }
 0x252   :  { %v295_v17 = vadd.f32 %v2502_v12, %v284_v14  ;;  %v275_v21 = vmul.f32 %v3058_v15, %v3467_v35  ;;  %v3060_v24 = vpop.eup %3059 }
 0x253   :  { %v276_v27 = vmul.f32 %v3060_v24, %v3474_v42  ;;  %v296_v29 = vadd.f32 %v2502_v12, %v285_v25 }
 0x254   :  { %v299_v22 = vpack.c.bf16 %v295_v17, %v294_v16  ;;  %v286_v23 = vmul.f32 %v2501_v5, %v275_v21 }
 0x255   :  { %v287_v31 = vmul.f32 %v2501_v5, %v276_v27 }
 0x256   :  { %2701 = vmatmul.mubr.msk.bf16.vlgmr.msra.gmra.mrb[0].mxu1 %vm149_vm0, %v299_v22  ;;  %v297_v26 = vadd.f32 %v2502_v12, %v286_v23 }
 0x257   :  { %2704 = vmatprep.mubr.msk.bf16.mxu1 %vm3284_vm2, %v3283_v50  ;;  %v298_v28 = vadd.f32 %v2502_v12, %v287_v31 }
 0x258   :  { %v300_v30 = vpack.c.bf16 %v297_v26, %v296_v29 }
 0x259   :  { %v3510_v32 = vpack.c.bf16 %v298_v28, %v298_v28 }
 0x25e   :  { %2705 = vmatmul.mubr.msk.bf16.gmra.mrb[4].mxu1 %vm149_vm0, %v300_v30 }
 0x25f   :  { %2708 = vmatprep.mubr.msk.bf16.mxu1 %vm3284_vm2, %v3283_v50 }
 0x266   :  { %2709 = vmatmul.mubr.msk.bf16.gmra.mrb[8].mxu1 %vm149_vm0, %v3510_v32 }
 0x267   :  { %2736 = vmatprep.mubr.msk.bf16.mxu1 %vm3284_vm2, %v3283_v50 }
 0x329   :  { %v357_v33 = vpop.f32.mrb[0].mxu1 }
 0x32a   :  { %v2702_v34 = vpop.f32.mrb[1].mxu1 }
 0x32b   :  { %v360_v35 = vpop.f32.mrb[2].mxu1 }
 0x32c   :  { %v3516_v36 = vpack.c.bf16 %v360_v35, %v357_v33  ;;  %v2703_v37 = vpop.f32.mrb[3].mxu1 }
 0x32e   :  { %385 = vrot.lane.b32.xlu0 %v3516_v36, %s3285_s23 }
 0x331   :  { %v365_v38 = vpop.f32.mrb[4].mxu1 }
 0x332   :  { %v2706_v39 = vpop.f32.mrb[5].mxu1 }
 0x333   :  { %v368_v40 = vpop.f32.mrb[6].mxu1 }
 0x334   :  { %v3520_v41 = vpack.c.bf16 %v368_v40, %v365_v38  ;;  %v2707_v42 = vpop.f32.mrb[7].mxu1 }
 0x336   :  { %618 = vrot.lane.b32.xlu0 %v3520_v41, %s3286_s24  ;;  %387 = vrot.lane.b32.xlu1 %v3520_v41, %s3285_s23 }
 0x339   :  { %v373_v43 = vpop.f32.mrb[8].mxu1 }
 0x33a   :  { %v3526_v44 = vpack.c.bf16 %v373_v43, %v373_v43  ;;  %610 = vrot.lane.b32.xlu0 %v3516_v36, %s3287_s28  ;;  %v2710_v45 = vpop.f32.mrb[9].mxu1 }
 0x33b   :  { %v376_v46 = vpop.f32.mrb[10].mxu1 }
 0x33c   :  { %389 = vrot.lane.b32.xlu1 %v3526_v44, %s3285_s23  ;;  %v2711_v47 = vpop.f32.mrb[11].mxu1 }
 0x33e   :  { %614 = vrot.lane.b32.xlu0 %v3526_v44, %s3287_s28 }
 0x340   :  { %616 = vrot.lane.b32.xlu1 %v3516_v36, %s3286_s24 }
 0x344   :  { %620 = vrot.lane.b32.xlu1 %v3526_v44, %s3286_s24 }
 0x348   :  { %612 = vrot.lane.b32.xlu1 %v3520_v41, %s3287_s28 }
 0x3a0   :  { %v386_v48 = vpop.permute.xlu0 %385 }
 0x3a1   :  { %v402_v49 = vsel %vm391_vm3, %v386_v48, 0 }
 0x3a2   :  { %2713 = vmatpush3.bf16.xpose.msra.mxu0 %v402_v49 }
 0x3a3   :  { %2714 = vmatprep.subr.bf16.mxu0 %v3283_v50 }
 0x3a8   :  { %v388_v51 = vpop.permute.xlu1 %387  ;;  %v619_v57 = vpop.permute.xlu0 %618 }
 0x3a9   :  { %v405_v52 = vsel %vm391_vm3, %v388_v51, 0  ;;  %v635_v58 = vsel %vm391_vm3, %v619_v57, 0 }
 0x3aa   :  { %2715 = vmatpush3.bf16.xpose.msra.mxu0 %v405_v52 }
 0x3ab   :  { %2716 = vmatprep.subr.bf16.mxu0 %v3283_v50 }
 0x3ac   :  { %v611_v61 = vpop.permute.xlu0 %610 }
 0x3ae   :  { %v390_v53 = vpop.permute.xlu1 %389 }
 0x3af   :  { %v408_v54 = vsel %vm391_vm3, %v390_v53, 0 }
 0x3b0   :  { %v615_v63 = vpop.permute.xlu0 %614 }
 0x3b2   :  { %2717 = vmatpush3.bf16.xpose.msra.mxu0 %v408_v54  ;;  %v617_v55 = vpop.permute.xlu1 %616 }
 0x3b3   :  { %2748 = vmatprep.subr.bf16.mxu0 %v3283_v50  ;;  %v632_v56 = vsel %vm391_vm3, %v617_v55, 0 }
 0x3b6   :  { %v621_v59 = vpop.permute.xlu1 %620 }
 0x3b7   :  { %v638_v60 = vsel %vm391_vm3, %v621_v59, 0 }
 0x3b9   :  { %2719 = vmatmul.mubr.msk.bf16.vlgmr.msra.gmra.mrb[4].mxu0 %vm391_vm3, %v3516_v36 }
 0x3ba   :  { %2749 = vmatpush3.bf16.xpose.msra.mxu0 %v632_v56  ;;  %2722 = vmatprep.mubr.msk.bf16.mxu0 %vm3284_vm2, %v3283_v50  ;;  %v613_v62 = vpop.permute.xlu1 %612 }
 0x3bb   :  { %2750 = vmatprep.subr.bf16.mxu0 %v3283_v50 }
 0x3c1   :  { %2723 = vmatmul.mubr.msk.bf16.gmra.mrb[8].mxu0 %vm391_vm3, %v3520_v41 }
 0x3c2   :  { %2751 = vmatpush3.bf16.xpose.msra.mxu0 %v635_v58  ;;  %2726 = vmatprep.mubr.msk.bf16.mxu0 %vm3284_vm2, %v3283_v50 }
 0x3c3   :  { %2752 = vmatprep.subr.bf16.mxu0 %v3283_v50 }
 0x3c9   :  { %2727 = vmatmul.mubr.msk.bf16.gmra.mrb[12].mxu0 %vm391_vm3, %v3526_v44 }
 0x3ca   :  { %2753 = vmatpush3.bf16.xpose.msra.mxu0 %v638_v60  ;;  %2754 = vmatprep.mubr.msk.bf16.mxu0 %vm3284_vm2, %v3283_v50 }
 0x3cb   :  { %2784 = vmatprep.subr.bf16.mxu0 %v3283_v50 }
 0x3d1   :  { %2755 = vmatmul.mubr.msk.bf16.vlgmr.msra.gmra.mrb[16].mxu0 %vm391_vm3, %v611_v61 }
 0x3d2   :  { %2758 = vmatprep.mubr.msk.bf16.mxu0 %vm3284_vm2, %v3283_v50 }
 0x3d9   :  { %2759 = vmatmul.mubr.msk.bf16.gmra.mrb[20].mxu0 %vm391_vm3, %v613_v62 }
 0x3da   :  { %2762 = vmatprep.mubr.msk.bf16.mxu0 %vm3284_vm2, %v3283_v50 }
 0x3e1   :  { %2763 = vmatmul.mubr.msk.bf16.gmra.mrb[24].mxu0 %vm391_vm3, %v615_v63 }
 0x3e2   :  { %2788 = vmatprep.mubr.msk.bf16.mxu0 %vm3284_vm2, %v3283_v50 }
 0x48c   :  { %v444_v0 = vpop.f32.mrb[4].mxu0 }
 0x48d   :  { %v3573_v1 = vmul.f32 0.25, %v444_v0  ;;  %v2720_v2 = vpop.f32.mrb[5].mxu0 }
 0x48e   :  { %v447_v3 = vpop.f32.mrb[6].mxu0 }
 0x48f   :  { %v3575_v4 = vmul.f32 0.25, %v447_v3  ;;  %v2721_v5 = vpop.f32.mrb[7].mxu0  ;;  %v472_v6 = vsel %vm471_vm4, %v3573_v1, -inf }
 0x490   :  { %473 = vmax.xlane.f32.xlu1 %v472_v6 }
 0x491   :  { %v475_v7 = vsel %vm471_vm4, %v3575_v4, -inf }
 0x492   :  { %476 = vmax.xlane.f32.xlu0 %v475_v7 }
 0x494   :  { %v452_v9 = vpop.f32.mrb[8].mxu0 }
 0x495   :  { %v468_v10 = vmul.f32 0.25, %v452_v9  ;;  %v2724_v12 = vpop.f32.mrb[9].mxu0 }
 0x496   :  { %v455_v14 = vpop.f32.mrb[10].mxu0 }
 0x497   :  { %v469_v15 = vmul.f32 0.25, %v455_v14  ;;  %v2725_v16 = vpop.f32.mrb[11].mxu0  ;;  %v478_v17 = vsel %vm471_vm4, %v468_v10, -inf }
 0x498   :  { %479 = vmax.xlane.f32.xlu0 %v478_v17 }
 0x499   :  { %v481_v19 = vsel %vm471_vm4, %v469_v15, -inf }
 0x49c   :  { %482 = vmax.xlane.f32.xlu0 %v481_v19  ;;  %v460_v21 = vpop.f32.mrb[12].mxu0 }
 0x49d   :  { %v470_v22 = vmul.f32 0.25, %v460_v21  ;;  %v2728_v23 = vpop.f32.mrb[13].mxu0 }
 0x49e   :  { %v463_v24 = vpop.f32.mrb[14].mxu0 }
 0x49f   :  { %v2729_v25 = vpop.f32.mrb[15].mxu0  ;;  %v485_v26 = vsel %vm484_vm5, %v470_v22, -inf }
 0x4a0   :  { %486 = vmax.xlane.f32.xlu1 %v485_v26 }
 0x4a4   :  { %v674_v27 = vpop.f32.mrb[16].mxu0 }
 0x4a5   :  { %v3584_v29 = vmul.f32 0.25, %v674_v27  ;;  %v2756_v30 = vpop.f32.mrb[17].mxu0 }
 0x4a6   :  { %v677_v31 = vpop.f32.mrb[18].mxu0 }
 0x4a7   :  { %v3586_v28 = vmul.f32 0.25, %v677_v31  ;;  %v2757_v33 = vpop.f32.mrb[19].mxu0  ;;  %v701_v34 = vsel %vm471_vm4, %v3584_v29, -inf }
 0x4a8   :  { %702 = vmax.xlane.f32.xlu0 %v701_v34 }
 0x4a9   :  { %v704_v35 = vsel %vm471_vm4, %v3586_v28, -inf }
 0x4aa   :  { %705 = vmax.xlane.f32.xlu1 %v704_v35 }
 0x4ac   :  { %v682_v37 = vpop.f32.mrb[20].mxu0 }
 0x4ad   :  { %v3592_v38 = vmul.f32 0.25, %v682_v37  ;;  %v2760_v39 = vpop.f32.mrb[21].mxu0 }
 0x4ae   :  { %v685_v40 = vpop.f32.mrb[22].mxu0 }
 0x4af   :  { %v3594_v42 = vmul.f32 0.25, %v685_v40  ;;  %v2761_v43 = vpop.f32.mrb[23].mxu0  ;;  %v707_v45 = vsel %vm471_vm4, %v3592_v38, -inf }
 0x4b0   :  { %708 = vmax.xlane.f32.xlu0 %v707_v45  ;;  %v3290_v45 = vmov 0  }
 0x4b1   :  { %v710_v46 = vsel %vm471_vm4, %v3594_v42, -inf }
 0x4b2   :  { %711 = vmax.xlane.f32.xlu1 %v710_v46  ;;  %v3650_v46 = vsel %vm548_vm6, 65535, %v3290_v45 }
 0x4b4   :  { %v690_v47 = vpop.f32.mrb[24].mxu0 }
 0x4b5   :  { %v3600_v48 = vmul.f32 0.25, %v690_v47  ;;  %v2764_v49 = vpop.f32.mrb[25].mxu0 }
 0x4b6   :  { %v693_v51 = vpop.f32.mrb[26].mxu0 }
 0x4b7   :  { %v2765_v52 = vpop.f32.mrb[27].mxu0  ;;  %v713_v53 = vsel %vm484_vm5, %v3600_v48, -inf }
 0x4b8   :  { %714 = vmax.xlane.f32.xlu0 %v713_v53 }
 0x4c3   :  { %533 = vrot.lane.b32.xlu1 %v3520_v41, %s3288_s1 }
 0x4c7   :  { %535 = vrot.lane.b32.xlu1 %v3526_v44, %s3288_s1 }
 0x4cb   :  { %759 = vrot.lane.b32.xlu1 %v3516_v36, %s3289_s25 }
 0x4ce   :  { %531 = vrot.lane.b32.xlu0 %v3516_v36, %s3288_s1 }
 0x51d   :  { %v474_v54 = vpop.xlane.xlu1 %473 }
 0x51e   :  { %v488_v55 = vsub.f32 %v3573_v1, %v474_v54 }
 0x51f   :  { %v477_v56 = vpop.xlane.xlu0 %476 }
 0x520   :  { %v493_v57 = vmul.f32 1.442695, %v488_v55  ;;  %v489_v58 = vsub.f32 %v3575_v4, %v477_v56 }
 0x522   :  { %3061 = vpow2.f32 %v493_v57  ;;  %v495_v59 = vmul.f32 1.442695, %v489_v58 }
 0x524   :  { %3063 = vpow2.f32 %v495_v59 }
 0x525   :  { %v480_v60 = vpop.xlane.xlu0 %479 }
 0x526   :  { %v490_v61 = vsub.f32 %v468_v10, %v480_v60 }
 0x528   :  { %v497_v62 = vmul.f32 1.442695, %v490_v61 }
 0x529   :  { %v483_v63 = vpop.xlane.xlu0 %482 }
 0x52a   :  { %3065 = vpow2.f32 %v497_v62  ;;  %v491_v0 = vsub.f32 %v469_v15, %v483_v63 }
 0x52c   :  { %v3614_v2 = vpop.eup %3061  ;;  %v499_v3 = vmul.f32 1.442695, %v491_v0 }
 0x52d   :  { %v487_v36 = vpop.xlane.xlu1 %486  ;;  %v503_v1 = vsel %vm471_vm4, %v3614_v2, 0.0 }
 0x52e   :  { %v3618_v5 = vpop.eup %3063  ;;  %3067 = vpow2.f32 %v499_v3  ;;  %v492_v4 = vsub.f32 %v470_v22, %v487_v36  ;;  %504 = vadd.xlane.f32.xlu1 %v503_v1 }
 0x52f   :  { %v506_v6 = vsel %vm471_vm4, %v3618_v5, 0.0 }
 0x530   :  { %v501_v7 = vmul.f32 1.442695, %v492_v4  ;;  %507 = vadd.xlane.f32.xlu0 %v506_v6 }
 0x532   :  { %3069 = vpow2.f32 %v501_v7 }
 0x534   :  { %v3622_v9 = vpop.eup %3065 }
 0x535   :  { %v703_v10 = vpop.xlane.xlu0 %702  ;;  %v509_v12 = vsel %vm471_vm4, %v3622_v9, 0.0 }
 0x536   :  { %v716_v14 = vsub.f32 %v3584_v29, %v703_v10  ;;  %510 = vadd.xlane.f32.xlu1 %v509_v12 }
 0x537   :  { %v706_v15 = vpop.xlane.xlu1 %705 }
 0x538   :  { %v3627_v16 = vpop.eup %3067  ;;  %v721_v17 = vmul.f32 1.442695, %v716_v14  ;;  %v717_v19 = vsub.f32 %v3586_v28, %v706_v15 }
 0x539   :  { %v512_v21 = vsel %vm471_vm4, %v3627_v16, 0.0 }
 0x53a   :  { %3071 = vpow2.f32 %v721_v17  ;;  %v723_v22 = vmul.f32 1.442695, %v717_v19  ;;  %513 = vadd.xlane.f32.xlu0 %v512_v21 }
 0x53c   :  { %v3632_v23 = vpop.eup %3069  ;;  %3073 = vpow2.f32 %v723_v22 }
 0x53d   :  { %v709_v24 = vpop.xlane.xlu0 %708  ;;  %v515_v25 = vsel %vm484_vm5, %v3632_v23, 0.0 }
 0x53e   :  { %v718_v26 = vsub.f32 %v3592_v38, %v709_v24  ;;  %516 = vadd.xlane.f32.xlu1 %v515_v25 }
 0x53f   :  { %v712_v27 = vpop.xlane.xlu1 %711 }
 0x540   :  { %v725_v29 = vmul.f32 1.442695, %v718_v26  ;;  %v719_v30 = vsub.f32 %v3594_v42, %v712_v27 }
 0x542   :  { %3075 = vpow2.f32 %v725_v29  ;;  %v727_v31 = vmul.f32 1.442695, %v719_v30 }
 0x543   :  { %v534_v38 = vpop.permute.xlu1 %533 }
 0x544   :  { %v3638_v28 = vpop.eup %3071  ;;  %3077 = vpow2.f32 %v727_v31 }
 0x545   :  { %v715_v33 = vpop.xlane.xlu0 %714  ;;  %v731_v34 = vsel %vm471_vm4, %v3638_v28, 0.0 }
 0x546   :  { %v3642_v35 = vpop.eup %3073  ;;  %v720_v37 = vsub.f32 %v3600_v48, %v715_v33  ;;  %732 = vadd.xlane.f32.xlu1 %v731_v34  ;;  %v3704_v34 = vld [vmem:[%s4188_s7] sm:$0xff]  }
 0x547   :  { %v734_v39 = vsel %vm471_vm4, %v3642_v35, 0.0  ;;  %v536_v47 = vpop.permute.xlu1 %535  ;;  %2785 = vmatpush3.bf16.msra.mxu0 %v3704_v34 }
 0x548   :  { %v729_v40 = vmul.f32 1.442695, %v720_v37  ;;  %735 = vadd.xlane.f32.xlu0 %v734_v39  ;;  %v552_v51 = vand.u32 %v3650_v46, %v536_v47  ;;  %2786 = vmatprep.subr.bf16.mxu0 %v3283_v50 }
 0x549   :  { %v532_v42 = vpop.permute.xlu0 %531 }
 0x54a   :  { %3079 = vpow2.f32 %v729_v40  ;;  %2731 = vmatpush3.bf16.msra.mxu1 %v532_v42 }
 0x54b   :  { %2732 = vmatprep.subr.bf16.mxu1 %v3283_v50  ;;  %v760_v55 = vpop.permute.xlu1 %759 }
 0x54c   :  { %v3648_v43 = vpop.eup %3075 }
 0x54d   :  { %v737_v48 = vsel %vm471_vm4, %v3648_v43, 0.0 }
 0x54e   :  { %v3654_v49 = vpop.eup %3077  ;;  %738 = vadd.xlane.f32.xlu0 %v737_v48  ;;  %2733 = vmatpush3.bf16.msra.mxu1 %v534_v38 }
 0x54f   :  { %2734 = vmatprep.subr.bf16.mxu1 %v3283_v50  ;;  %v740_v52 = vsel %vm471_vm4, %v3654_v49, 0.0 }
 0x552   :  { %741 = vadd.xlane.f32.xlu0 %v740_v52  ;;  %2735 = vmatpush3.bf16.msra.mxu1 %v552_v51  ;;  %v3711_v52 = vld [vmem:[%s4188_s7 + $0x8] sm:$0xff]  }
 0x553   :  { %2766 = vmatprep.subr.bf16.mxu1 %v3283_v50  ;;  %2787 = vmatpush3.bf16.msra.mxu0 %v3711_v52 }
 0x554   :  { %v3661_v53 = vpop.eup %3079  ;;  %2816 = vmatprep.subr.bf16.mxu0 %v3283_v50 }
 0x555   :  { %v743_v54 = vsel %vm484_vm5, %v3661_v53, 0.0 }
 0x556   :  { %744 = vadd.xlane.f32.xlu0 %v743_v54 }
 0x557   :  { %763 = vrot.lane.b32.xlu1 %v3526_v44, %s3289_s25 }
 0x56c   :  { %761 = vrot.lane.b32.xlu0 %v3520_v41, %s3289_s25 }
 0x5bb   :  { %v505_v56 = vpop.xlane.xlu1 %504 }
 0x5bc   :  { %3081 = vrcp.f32 %v505_v56 }
 0x5bd   :  { %v508_v57 = vpop.xlane.xlu0 %507 }
 0x5be   :  { %3083 = vrcp.f32 %v508_v57 }
 0x5c3   :  { %v511_v58 = vpop.xlane.xlu1 %510 }
 0x5c4   :  { %3085 = vrcp.f32 %v511_v58 }
 0x5c6   :  { %v3082_v59 = vpop.eup %3081 }
 0x5c7   :  { %v514_v60 = vpop.xlane.xlu0 %513  ;;  %v523_v62 = vmul.f32 %v3082_v59, %v3614_v2 }
 0x5c8   :  { %v3084_v61 = vpop.eup %3083  ;;  %3087 = vrcp.f32 %v514_v60 }
 0x5c9   :  { %v524_v63 = vmul.f32 %v3084_v61, %v3618_v5 }
 0x5cb   :  { %v528_v0 = vpack.c.bf16 %v524_v63, %v523_v62  ;;  %v517_v44 = vpop.xlane.xlu1 %516 }
 0x5cc   :  { %3089 = vrcp.f32 %v517_v44 }
 0x5cd   :  { %2737 = vmatmul.mubr.msk.bf16.vlgmr.msra.gmra.mrb[12].mxu1 %vm471_vm4, %v528_v0 }
 0x5ce   :  { %2767 = vmatpush3.bf16.msra.mxu1 %v760_v55  ;;  %2740 = vmatprep.mubr.msk.bf16.mxu1 %vm3284_vm2, %v3283_v50  ;;  %v3086_v41 = vpop.eup %3085 }
 0x5cf   :  { %2768 = vmatprep.subr.bf16.mxu1 %v3283_v50  ;;  %v525_v36 = vmul.f32 %v3086_v41, %v3622_v9 }
 0x5d2   :  { %v3088_v3 = vpop.eup %3087 }
 0x5d3   :  { %v526_v1 = vmul.f32 %v3088_v3, %v3627_v16  ;;  %v733_v7 = vpop.xlane.xlu1 %732 }
 0x5d5   :  { %v529_v2 = vpack.c.bf16 %v526_v1, %v525_v36  ;;  %v736_v5 = vpop.xlane.xlu0 %735 }
 0x5d6   :  { %v3090_v4 = vpop.eup %3089  ;;  %3091 = vrcp.f32 %v736_v5 }
 0x5d7   :  { %2741 = vmatmul.mubr.msk.bf16.gmra.mrb[16].mxu1 %vm471_vm4, %v529_v2  ;;  %v527_v6 = vmul.f32 %v3090_v4, %v3632_v23  ;;  %3093 = vrcp.f32 %v733_v7  ;;  %v764_v16 = vpop.permute.xlu1 %763 }
 0x5d8   :  { %2744 = vmatprep.mubr.msk.bf16.mxu1 %vm3284_vm2, %v3283_v50  ;;  %v777_v22 = vand.u32 %v764_v16, %v3650_v46 }
 0x5d9   :  { %v530_v12 = vpack.c.bf16 %v527_v6, %v527_v6 }
 0x5db   :  { %v739_v10 = vpop.xlane.xlu0 %738 }
 0x5df   :  { %2745 = vmatmul.mubr.msk.bf16.gmra.mrb[20].mxu1 %vm471_vm4, %v530_v12  ;;  %v742_v9 = vpop.xlane.xlu0 %741 }
 0x5e0   :  { %2772 = vmatprep.mubr.msk.bf16.mxu1 %vm3284_vm2, %v3283_v50  ;;  %3095 = vrcp.f32 %v742_v9  ;;  %v3092_v15 = vpop.eup %3091 }
 0x5e1   :  { %3097 = vrcp.f32 %v739_v10  ;;  %v3094_v19 = vpop.eup %3093  ;;  %v752_v21 = vmul.f32 %v3092_v15, %v3642_v35 }
 0x5e2   :  { %v751_v23 = vmul.f32 %v3094_v19, %v3638_v28 }
 0x5e3   :  { %v745_v14 = vpop.xlane.xlu0 %744 }
 0x5e4   :  { %3099 = vrcp.f32 %v745_v14  ;;  %v756_v24 = vpack.c.bf16 %v752_v21, %v751_v23  ;;  %v2525_v21 = vld [vmem:[%s4189_s8] ss:$0 sm:$0xff] }
 0x5e7   :  { %v762_v17 = vpop.permute.xlu0 %761 }
 0x5e8   :  { %2769 = vmatpush3.bf16.msra.mxu1 %v762_v17 }
 0x5e9   :  { %2770 = vmatprep.subr.bf16.mxu1 %v3283_v50 }
 0x5ea   :  { %v3096_v25 = vpop.eup %3095 }
 0x5eb   :  { %v3098_v26 = vpop.eup %3097  ;;  %v754_v27 = vmul.f32 %v3096_v25, %v3654_v49 }
 0x5ec   :  { %2771 = vmatpush3.bf16.msra.mxu1 %v777_v22  ;;  %v753_v29 = vmul.f32 %v3098_v26, %v3648_v43 }
 0x5ed   :  { %2800 = vmatprep.subr.bf16.mxu1 %v3283_v50 }
 0x5ee   :  { %v757_v30 = vpack.c.bf16 %v754_v27, %v753_v29  ;;  %v3100_v31 = vpop.eup %3099 }
 0x5ef   :  { %2773 = vmatmul.mubr.msk.bf16.vlgmr.msra.gmra.mrb[24].mxu1 %vm471_vm4, %v756_v24  ;;  %v755_v28 = vmul.f32 %v3100_v31, %v3661_v53 }
 0x5f0   :  { %2776 = vmatprep.mubr.msk.bf16.mxu1 %vm3284_vm2, %v3283_v50 }
 0x5f1   :  { %v758_v33 = vpack.c.bf16 %v755_v28, %v755_v28 }
 0x5f7   :  { %2777 = vmatmul.mubr.msk.bf16.gmra.mrb[28].mxu1 %vm471_vm4, %v757_v30 }
 0x5f8   :  { %2780 = vmatprep.mubr.msk.bf16.mxu1 %vm3284_vm2, %v3283_v50 }
 0x5ff   :  { %2781 = vmatmul.mubr.msk.bf16.gmra.mrb[32].mxu1 %vm471_vm4, %v758_v33 }
 0x600   :  { %2804 = vmatprep.mubr.msk.bf16.mxu1 %vm3284_vm2, %v3283_v50 }
 0x6a0   :  { %v588_v35 = vpop.f32.mrb[12].mxu1 }
 0x6a1   :  { %v2738_v37 = vpop.f32.mrb[13].mxu1 }
 0x6a2   :  { %v591_v38 = vpop.f32.mrb[14].mxu1 }
 0x6a3   :  { %v2739_v39 = vpop.f32.mrb[15].mxu1 }
 0x6aa   :  { %v596_v40 = vpop.f32.mrb[16].mxu1 }
 0x6ab   :  { %v2742_v42 = vpop.f32.mrb[17].mxu1 }
 0x6ac   :  { %v599_v43 = vpop.f32.mrb[18].mxu1 }
 0x6ad   :  { %v2743_v45 = vpop.f32.mrb[19].mxu1 }
 0x6b2   :  { %v604_v47 = vpop.f32.mrb[20].mxu1 }
 0x6b3   :  { %v2746_v48 = vpop.f32.mrb[21].mxu1 }
 0x6b4   :  { %v607_v49 = vpop.f32.mrb[22].mxu1 }
 0x6b5   :  { %v2747_v51 = vpop.f32.mrb[23].mxu1 }
 0x6c2   :  { %v813_v53 = vpop.f32.mrb[24].mxu1 }
 0x6c3   :  { %v2774_v54 = vpop.f32.mrb[25].mxu1 }
 0x6c4   :  { %v816_v55 = vpop.f32.mrb[26].mxu1 }
 0x6c5   :  { %v3013_v56 = vpack.i.bf16 %v816_v55, %v813_v53  ;;  %v2775_v57 = vpop.f32.mrb[27].mxu1 }
 0x6c7   :  { %3014 = vrot.lane.b32.xlu1 %v3013_v56, %s3291_s21 }
 0x6ca   :  { %v821_v58 = vpop.f32.mrb[28].mxu1 }
 0x6cb   :  { %v2778_v59 = vpop.f32.mrb[29].mxu1 }
 0x6cc   :  { %v824_v60 = vpop.f32.mrb[30].mxu1 }
 0x6cd   :  { %v3018_v61 = vpack.i.bf16 %v824_v60, %v821_v58  ;;  %v2779_v62 = vpop.f32.mrb[31].mxu1 }
 0x6cf   :  { %3019 = vrot.lane.b32.xlu1 %v3018_v61, %s3291_s21 }
 0x6d2   :  { %v829_v63 = vpop.f32.mrb[32].mxu1 }
 0x6d3   :  { %848 = vrot.lane.b32.xlu1 %v829_v63, %s3291_s21  ;;  %v2782_v0 = vpop.f32.mrb[33].mxu1 }
 0x6d4   :  { %v832_v44 = vpop.f32.mrb[34].mxu1 }
 0x6d5   :  { %v2783_v41 = vpop.f32.mrb[35].mxu1 }
 0x739   :  { %v3015_v3 = vpop.permute.xlu1 %3014 }
 0x73a   :  { %v3017_v36 = vunpack.i.h.bf16 %v3015_v3  ;;  %v3016_v1 = vunpack.i.l.bf16 %v3015_v3 }
 0x73c   :  { %v856_v2 = vsel %vm391_vm3, %v591_v38, %v3017_v36  ;;  %v855_v4 = vsel %vm391_vm3, %v588_v35, %v3016_v1 }
 0x73d   :  { %v860_v5 = vpack.c.bf16 %v856_v2, %v855_v4 }
 0x73f   :  { %2789 = vmatmul.mubr.msk.bf16.vlgmr.msra.gmra.mrb[28].mxu0 %vm149_vm0, %v860_v5 }
 0x740   :  { %2792 = vmatprep.mubr.msk.bf16.mxu0 %vm3284_vm2, %v3283_v50 }
 0x741   :  { %v3020_v6 = vpop.permute.xlu1 %3019 }
 0x742   :  { %v3022_v7 = vunpack.i.h.bf16 %v3020_v6  ;;  %v3021_v10 = vunpack.i.l.bf16 %v3020_v6 }
 0x744   :  { %v858_v12 = vsel %vm391_vm3, %v599_v43, %v3022_v7  ;;  %v857_v9 = vsel %vm391_vm3, %v596_v40, %v3021_v10 }
 0x745   :  { %v861_v14 = vpack.c.bf16 %v858_v12, %v857_v9  ;;  %v849_v15 = vpop.permute.xlu1 %848  ;;  %v3041_v9 = vld [vmem:[%s4192_s11] sm:$0xff]  }
 0x746   :  { %v859_v16 = vsel %vm391_vm3, %v604_v47, %v849_v15  ;;  %2801 = vmatpush3.bf16.msra.mxu1 %v3041_v9 }
 0x747   :  { %2793 = vmatmul.mubr.msk.bf16.gmra.mrb[32].mxu0 %vm149_vm0, %v861_v14  ;;  %v862_v17 = vpack.c.bf16 %v859_v16, %v859_v16  ;;  %2802 = vmatprep.subr.bf16.mxu1 %v3283_v50  ;;  %v3042_v14 = vld [vmem:[%s4192_s11 + $0x8] sm:$0xff]  }
 0x748   :  { %2796 = vmatprep.mubr.msk.bf16.mxu0 %vm3284_vm2, %v3283_v50 }
 0x74a   :  { %2803 = vmatpush3.bf16.msra.mxu1 %v3042_v14 }
 0x74b   :  { %2830 = vmatprep.subr.bf16.mxu1 %v3283_v50 }
 0x74f   :  { %2797 = vmatmul.mubr.msk.bf16.gmra.mrb[36].mxu0 %vm149_vm0, %v862_v17 }
 0x750   :  { %2818 = vmatprep.mubr.msk.bf16.mxu0 %vm3284_vm2, %v3283_v50 }
 0x812   :  { %v918_v19 = vpop.f32.mrb[28].mxu0 }
 0x813   :  { %v940_v22 = vadd.f32 %v918_v19, %v3441_v11  ;;  %v2790_v23 = vpop.f32.mrb[29].mxu0 }
 0x814   :  { %v921_v24 = vpop.f32.mrb[30].mxu0 }
 0x815   :  { %v941_v25 = vadd.f32 %v921_v24, %v3450_v18  ;;  %v2791_v26 = vpop.f32.mrb[31].mxu0  ;;  %v951_v27 = vadd.f32 %v2525_v21, %v940_v22 }
 0x817   :  { %v956_v29 = vsel %vm149_vm0, %v951_v27, 0.0  ;;  %v952_v30 = vadd.f32 %v2525_v21, %v941_v25 }
 0x818   :  { %957 = vadd.xlane.f32.xlu0 %v956_v29 }
 0x819   :  { %v959_v31 = vsel %vm149_vm0, %v952_v30, 0.0 }
 0x81a   :  { %v926_v28 = vpop.f32.mrb[32].mxu0  ;;  %960 = vadd.xlane.f32.xlu1 %v959_v31 }
 0x81b   :  { %v942_v33 = vadd.f32 %v926_v28, %v3436_v8  ;;  %v2794_v35 = vpop.f32.mrb[33].mxu0 }
 0x81c   :  { %v929_v37 = vpop.f32.mrb[34].mxu0 }
 0x81d   :  { %v943_v11 = vadd.f32 %v929_v37, %v3443_v13  ;;  %v2795_v38 = vpop.f32.mrb[35].mxu0  ;;  %v953_v39 = vadd.f32 %v2525_v21, %v942_v33 }
 0x81f   :  { %v962_v18 = vsel %vm149_vm0, %v953_v39, 0.0  ;;  %v954_v40 = vadd.f32 %v2525_v21, %v943_v11 }
 0x820   :  { %963 = vadd.xlane.f32.xlu0 %v962_v18 }
 0x821   :  { %v965_v47 = vsel %vm149_vm0, %v954_v40, 0.0 }
 0x822   :  { %v934_v42 = vpop.f32.mrb[36].mxu0 }
 0x823   :  { %v944_v43 = vadd.f32 %v934_v42, %v3454_v20  ;;  %v2798_v45 = vpop.f32.mrb[37].mxu0 }
 0x824   :  { %966 = vadd.xlane.f32.xlu0 %v965_v47  ;;  %v937_v48 = vpop.f32.mrb[38].mxu0 }
 0x825   :  { %v3744_v49 = vadd.f32 %v2525_v21, %v944_v43  ;;  %v2799_v8 = vpop.f32.mrb[39].mxu0 }
 0x827   :  { %v968_v13 = vsel %vm222_vm1, %v3744_v49, 0.0 }
 0x828   :  { %969 = vadd.xlane.f32.xlu0 %v968_v13 }
 0x8a5   :  { %v958_v51 = vpop.xlane.xlu0 %957 }
 0x8a6   :  { %v971_v53 = vmul.f32 0.03125, %v958_v51 }
 0x8a7   :  { %v961_v54 = vpop.xlane.xlu1 %960 }
 0x8a8   :  { %v976_v55 = vsub.f32 %v951_v27, %v971_v53  ;;  %v972_v56 = vmul.f32 0.03125, %v961_v54 }
 0x8aa   :  { %v977_v57 = vsub.f32 %v952_v30, %v972_v56  ;;  %v981_v58 = vmul.f32 %v976_v55, %v976_v55  ;;  %v2526_v30 = vld [vmem:[%s4190_s9] ss:$0 sm:$0xff] }
 0x8ac   :  { %v986_v59 = vsel %vm149_vm0, %v981_v58, 0.0  ;;  %v982_v60 = vmul.f32 %v977_v57, %v977_v57 }
 0x8ad   :  { %v964_v61 = vpop.xlane.xlu0 %963  ;;  %987 = vadd.xlane.f32.xlu1 %v986_v59 }
 0x8ae   :  { %v973_v62 = vmul.f32 0.03125, %v964_v61  ;;  %v989_v63 = vsel %vm149_vm0, %v982_v60, 0.0 }
 0x8af   :  { %990 = vadd.xlane.f32.xlu0 %v989_v63  ;;  %v2528_v63 = vld [vmem:[%s4193_s12] ss:$0 sm:$0xff] }
 0x8b0   :  { %v978_v0 = vsub.f32 %v953_v39, %v973_v62  ;;  %v2527_v39 = vld [vmem:[%s4191_s10] ss:$0 sm:$0xff] }
 0x8b1   :  { %v967_v44 = vpop.xlane.xlu0 %966  ;;  %v3043_v62 = vld [vmem:[%s4194_s13] sm:$0xff]  }
 0x8b2   :  { %v974_v41 = vmul.f32 0.03125, %v967_v44  ;;  %v983_v3 = vmul.f32 %v978_v0, %v978_v0  ;;  %2817 = vmatpush3.bf16.msra.mxu0 %v3043_v62 }
 0x8b3   :  { %2852 = vmatprep.subr.bf16.mxu0 %v3283_v50 }
 0x8b4   :  { %v979_v36 = vsub.f32 %v954_v40, %v974_v41  ;;  %v992_v1 = vsel %vm149_vm0, %v983_v3, 0.0 }
 0x8b5   :  { %993 = vadd.xlane.f32.xlu1 %v992_v1  ;;  %v970_v2 = vpop.xlane.xlu0 %969 }
 0x8b6   :  { %v975_v4 = vmul.f32 0.03125, %v970_v2  ;;  %v984_v5 = vmul.f32 %v979_v36, %v979_v36 }
 0x8b8   :  { %v980_v6 = vsub.f32 %v3744_v49, %v975_v4  ;;  %v995_v7 = vsel %vm149_vm0, %v984_v5, 0.0 }
 0x8b9   :  { %996 = vadd.xlane.f32.xlu0 %v995_v7 }
 0x8ba   :  { %v985_v10 = vmul.f32 %v980_v6, %v980_v6 }
 0x8bc   :  { %v998_v12 = vsel %vm222_vm1, %v985_v10, 0.0 }
 0x8bd   :  { %999 = vadd.xlane.f32.xlu1 %v998_v12 }
 0x93a   :  { %v988_v15 = vpop.xlane.xlu1 %987 }
 0x93b   :  { %v1001_v16 = vmul.f32 0.03125, %v988_v15 }
 0x93c   :  { %v991_v17 = vpop.xlane.xlu0 %990 }
 0x93d   :  { %v1006_v19 = vadd.f32 1e-05, %v1001_v16  ;;  %v1002_v21 = vmul.f32 0.03125, %v991_v17 }
 0x93f   :  { %3101 = vrsqrt.f32 %v1006_v19  ;;  %v1007_v22 = vadd.f32 1e-05, %v1002_v21 }
 0x941   :  { %3103 = vrsqrt.f32 %v1007_v22 }
 0x942   :  { %v994_v23 = vpop.xlane.xlu1 %993 }
 0x943   :  { %v1003_v24 = vmul.f32 0.03125, %v994_v23 }
 0x945   :  { %v1008_v25 = vadd.f32 1e-05, %v1003_v24 }
 0x946   :  { %v997_v26 = vpop.xlane.xlu0 %996 }
 0x947   :  { %3105 = vrsqrt.f32 %v1008_v25  ;;  %v1004_v27 = vmul.f32 0.03125, %v997_v26 }
 0x949   :  { %v3102_v29 = vpop.eup %3101  ;;  %v1009_v31 = vadd.f32 1e-05, %v1004_v27 }
 0x94a   :  { %v1016_v28 = vmul.f32 %v3102_v29, %v976_v55  ;;  %v1000_v33 = vpop.xlane.xlu1 %999 }
 0x94b   :  { %v3104_v35 = vpop.eup %3103  ;;  %3107 = vrsqrt.f32 %v1009_v31  ;;  %v1005_v37 = vmul.f32 0.03125, %v1000_v33 }
 0x94c   :  { %v1027_v11 = vmul.f32 %v2526_v30, %v1016_v28  ;;  %v1017_v38 = vmul.f32 %v3104_v35, %v977_v57 }
 0x94d   :  { %v1010_v18 = vadd.f32 1e-05, %v1005_v37 }
 0x94e   :  { %v1028_v40 = vmul.f32 %v2526_v30, %v1017_v38  ;;  %v1038_v42 = vadd.f32 %v2527_v39, %v1027_v11 }
 0x94f   :  { %3109 = vrsqrt.f32 %v1010_v18 }
 0x950   :  { %v1039_v43 = vadd.f32 %v2527_v39, %v1028_v40 }
 0x951   :  { %v3106_v45 = vpop.eup %3105 }
 0x952   :  { %v1018_v47 = vmul.f32 %v3106_v45, %v978_v0  ;;  %v1043_v48 = vpack.c.bf16 %v1039_v43, %v1038_v42 }
 0x954   :  { %2805 = vmatmul.mubr.msk.bf16.vlgmr.msra.gmra.mrb[36].mxu1 %vm149_vm0, %v1043_v48  ;;  %v1029_v51 = vmul.f32 %v2526_v30, %v1018_v47 }
 0x955   :  { %v3108_v8 = vpop.eup %3107  ;;  %2808 = vmatprep.mubr.msk.bf16.mxu1 %vm3284_vm2, %v3283_v50 }
 0x956   :  { %v1019_v13 = vmul.f32 %v3108_v8, %v979_v36  ;;  %v1040_v55 = vadd.f32 %v2527_v39, %v1029_v51 }
 0x958   :  { %v1030_v53 = vmul.f32 %v2526_v30, %v1019_v13 }
 0x959   :  { %v3110_v54 = vpop.eup %3109 }
 0x95a   :  { %v1041_v56 = vadd.f32 %v2527_v39, %v1030_v53  ;;  %v1020_v57 = vmul.f32 %v3110_v54, %v980_v6 }
 0x95c   :  { %v1044_v58 = vpack.c.bf16 %v1041_v56, %v1040_v55  ;;  %v1031_v59 = vmul.f32 %v2526_v30, %v1020_v57 }
 0x95e   :  { %2809 = vmatmul.mubr.msk.bf16.gmra.mrb[40].mxu1 %vm149_vm0, %v1044_v58  ;;  %v1042_v60 = vadd.f32 %v2527_v39, %v1031_v59 }
 0x95f   :  { %2812 = vmatprep.mubr.msk.bf16.mxu1 %vm3284_vm2, %v3283_v50 }
 0x960   :  { %v1045_v61 = vpack.c.bf16 %v1042_v60, %v1042_v60 }
 0x966   :  { %2813 = vmatmul.mubr.msk.bf16.gmra.mrb[44].mxu1 %vm149_vm0, %v1045_v61  ;;  %v3189_v61 = vld [vmem:[%s4187_s6] sm:$0xff]  }
 0x967   :  { %2834 = vmatprep.mubr.msk.bf16.mxu1 %vm3284_vm2, %v3283_v50 }
 0xa27   :  { %v1107_v0 = vpop.f32.mrb[36].mxu1 }
 0xa28   :  { %v1108_v44 = vadd.f32 %v2528_v63, %v1107_v0  ;;  %v2806_v41 = vpop.f32.mrb[37].mxu1 }
 0xa29   :  { %v1110_v3 = vpop.f32.mrb[38].mxu1 }
 0xa2a   :  { %v1129_v36 = vmul.f32 %v1108_v44, %v1108_v44  ;;  %v1111_v1 = vadd.f32 %v2528_v63, %v1110_v3  ;;  %v2807_v2 = vpop.f32.mrb[39].mxu1 }
 0xa2c   :  { %v1134_v4 = vmul.f32 %v1129_v36, %v1108_v44  ;;  %v1130_v5 = vmul.f32 %v1111_v1, %v1111_v1 }
 0xa2e   :  { %v1139_v6 = vmul.f32 0.044715, %v1134_v4  ;;  %v1135_v7 = vmul.f32 %v1130_v5, %v1111_v1 }
 0xa30   :  { %v1144_v10 = vadd.f32 %v1139_v6, %v1108_v44  ;;  %v1140_v12 = vmul.f32 0.044715, %v1135_v7  ;;  %v3044_v7 = vld [vmem:[%s4196_s15] sm:$0xff]  }
 0xa31   :  { %v1115_v9 = vpop.f32.mrb[40].mxu1  ;;  %2831 = vmatpush3.bf16.msra.mxu1 %v3044_v7 }
 0xa32   :  { %v1149_v14 = vmul.f32 0.7978846, %v1144_v10  ;;  %v1145_v15 = vadd.f32 %v1140_v12, %v1111_v1  ;;  %v1116_v16 = vadd.f32 %v2528_v63, %v1115_v9  ;;  %v2810_v17 = vpop.f32.mrb[41].mxu1  ;;  %2832 = vmatprep.subr.bf16.mxu1 %v3283_v50  ;;  %v3045_v10 = vld [vmem:[%s4196_s15 + $0x8] sm:$0xff]  }
 0xa33   :  { %v1118_v19 = vpop.f32.mrb[42].mxu1 }
 0xa34   :  { %3111 = vtanh.f32 %v1149_v14  ;;  %v1150_v21 = vmul.f32 0.7978846, %v1145_v15  ;;  %v1131_v22 = vmul.f32 %v1116_v16, %v1116_v16  ;;  %v1119_v23 = vadd.f32 %v2528_v63, %v1118_v19  ;;  %v2811_v24 = vpop.f32.mrb[43].mxu1 }
 0xa35   :  { %2833 = vmatpush3.bf16.msra.mxu1 %v3045_v10 }
 0xa36   :  { %3113 = vtanh.f32 %v1150_v21  ;;  %v1136_v25 = vmul.f32 %v1131_v22, %v1116_v16  ;;  %v1132_v26 = vmul.f32 %v1119_v23, %v1119_v23  ;;  %2838 = vmatprep.subr.bf16.mxu1 %v3283_v50  ;;  %v2538_v22 = vld [vmem:[%s4195_s14] ss:$0 sm:$0xff] }
 0xa38   :  { %v1141_v27 = vmul.f32 0.044715, %v1136_v25  ;;  %v1137_v29 = vmul.f32 %v1132_v26, %v1119_v23 }
 0xa39   :  { %v1123_v30 = vpop.f32.mrb[44].mxu1 }
 0xa3a   :  { %v1146_v31 = vadd.f32 %v1141_v27, %v1116_v16  ;;  %v1142_v28 = vmul.f32 0.044715, %v1137_v29  ;;  %v1124_v33 = vadd.f32 %v2528_v63, %v1123_v30  ;;  %v2814_v35 = vpop.f32.mrb[45].mxu1 }
 0xa3b   :  { %v1126_v37 = vpop.f32.mrb[46].mxu1 }
 0xa3c   :  { %v1151_v11 = vmul.f32 0.7978846, %v1146_v31  ;;  %v1147_v38 = vadd.f32 %v1142_v28, %v1119_v23  ;;  %v1133_v39 = vmul.f32 %v1124_v33, %v1124_v33  ;;  %v2815_v18 = vpop.f32.mrb[47].mxu1  ;;  %v3046_v31 = vld [vmem:[%s4197_s16] sm:$0xff]   ;;  %v3047_v28 = vld [vmem:[%s4207_s27 + $0x10] sm:$0xff]  }
 0xa3e   :  { %v3112_v40 = vpop.eup %3111  ;;  %3115 = vtanh.f32 %v1151_v11  ;;  %v1152_v42 = vmul.f32 0.7978846, %v1147_v38  ;;  %v1138_v43 = vmul.f32 %v1133_v39, %v1124_v33  ;;  %v3049_v39 = vld [vmem:[%s4208_s20 + $0x10] sm:$0xff]  }
 0xa3f   :  { %v1159_v45 = vadd.f32 1.0, %v3112_v40  ;;  %v3048_v40 = vld [vmem:[%s4207_s27 + $0x18] sm:$0xff]  }
 0xa40   :  { %v3114_v47 = vpop.eup %3113  ;;  %3117 = vtanh.f32 %v1152_v42  ;;  %v1143_v48 = vmul.f32 0.044715, %v1138_v43  ;;  %v3050_v42 = vld [vmem:[%s4208_s20 + $0x18] sm:$0xff]   ;;  %v118_v43 = vld [vmem:[%s4198_s17] sm:$0x1] }
 0xa41   :  { %v1164_v8 = vmul.f32 0.5, %v1159_v45  ;;  %v1160_v13 = vadd.f32 1.0, %v3114_v47 }
 0xa42   :  { %v1148_v51 = vadd.f32 %v1143_v48, %v1124_v33 }
 0xa43   :  { %v1165_v53 = vmul.f32 0.5, %v1160_v13  ;;  %v1169_v55 = vmul.f32 %v1164_v8, %v1108_v44  ;;  %v3190_v44 = vld [vmem:[%s4187_s6 + $0x8] sm:$0xff]  }
 0xa44   :  { %v1153_v54 = vmul.f32 0.7978846, %v1148_v51 }
 0xa45   :  { %v1170_v56 = vmul.f32 %v1165_v53, %v1111_v1 }
 0xa46   :  { %3119 = vtanh.f32 %v1153_v54  ;;  %v3191_v54 = vld [vmem:[%s4184_s3] sm:$0xff] }
 0xa47   :  { %v1174_v57 = vpack.c.bf16 %v1170_v56, %v1169_v55 }
 0xa48   :  { %v3116_v58 = vpop.eup %3115 }
 0xa49   :  { %v1161_v59 = vadd.f32 1.0, %v3116_v58  ;;  %2819 = vmatmul.mubr.msk.bf16.vlgmr.msra.gmra.mrb[40].mxu0 %vm391_vm3, %v1174_v57  ;;  %v3192_v58 = vld [vmem:[%s4184_s3 + $0x10] sm:$0xff] }
 0xa4a   :  { %v3118_v60 = vpop.eup %3117  ;;  %2822 = vmatprep.mubr.msk.bf16.mxu0 %vm3284_vm2, %v3283_v50  ;;  %2853 = vmatpush3.bf16.msra.mxu0 %v3189_v61 }
 0xa4b   :  { %v1166_v62 = vmul.f32 0.5, %v1161_v59  ;;  %v1162_v63 = vadd.f32 1.0, %v3118_v60  ;;  %2854 = vmatprep.subr.bf16.mxu0 %v3283_v50  ;;  %v3193_v60 = vld [vmem:[%s4184_s3 + $0x8] sm:$0xff] }
 0xa4d   :  { %v1167_v0 = vmul.f32 0.5, %v1162_v63  ;;  %v1171_v41 = vmul.f32 %v1166_v62, %v1116_v16  ;;  %v3194_v63 = vld [vmem:[%s4184_s3 + $0x18] sm:$0xff] }
 0xa4e   :  { %2855 = vmatpush3.bf16.msra.mxu0 %v3190_v44 }
 0xa4f   :  { %v1172_v3 = vmul.f32 %v1167_v0, %v1119_v23  ;;  %2886 = vmatprep.subr.bf16.mxu0 %v3283_v50 }
 0xa50   :  { %v3120_v36 = vpop.eup %3119 }
 0xa51   :  { %v1175_v1 = vpack.c.bf16 %v1172_v3, %v1171_v41  ;;  %v1163_v2 = vadd.f32 1.0, %v3120_v36 }
 0xa53   :  { %2823 = vmatmul.mubr.msk.bf16.gmra.mrb[44].mxu0 %vm391_vm3, %v1175_v1  ;;  %v1168_v4 = vmul.f32 0.5, %v1163_v2 }
 0xa54   :  { %2826 = vmatprep.mubr.msk.bf16.mxu0 %vm3284_vm2, %v3283_v50 }
 0xa55   :  { %v1173_v5 = vmul.f32 %v1168_v4, %v1124_v33 }
 0xa57   :  { %v1176_v6 = vpack.c.bf16 %v1173_v5, %v1173_v5 }
 0xa5b   :  { %2827 = vmatmul.mubr.msk.bf16.gmra.mrb[48].mxu0 %vm391_vm3, %v1176_v6 }
 0xa5c   :  { %2856 = vmatprep.mubr.msk.bf16.mxu0 %vm3284_vm2, %v3283_v50 }
 0xb1c   :  { %v1226_v12 = vpop.f32.mrb[40].mxu0 }
 0xb1d   :  { %v2820_v9 = vpop.f32.mrb[41].mxu0 }
 0xb1e   :  { %v1228_v14 = vpop.f32.mrb[42].mxu0 }
 0xb1f   :  { %v2821_v15 = vpop.f32.mrb[43].mxu0 }
 0xb26   :  { %v1232_v16 = vpop.f32.mrb[44].mxu0 }
 0xb27   :  { %v2824_v17 = vpop.f32.mrb[45].mxu0 }
 0xb28   :  { %v1234_v19 = vpop.f32.mrb[46].mxu0 }
 0xb29   :  { %v2825_v21 = vpop.f32.mrb[47].mxu0 }
 0xb2e   :  { %v1238_v23 = vpop.f32.mrb[48].mxu0 }
 0xb2f   :  { %v1244_v24 = vadd.f32 %v1238_v23, %v3744_v49  ;;  %v2828_v25 = vpop.f32.mrb[49].mxu0 }
 0xb30   :  { %v1241_v26 = vpop.f32.mrb[50].mxu0 }
 0xb31   :  { %v1251_v27 = vadd.f32 %v2538_v22, %v1244_v24  ;;  %v2829_v29 = vpop.f32.mrb[51].mxu0 }
 0xb33   :  { %v1252_v30 = vpack.c.bf16 %v1251_v27, %v1251_v27 }
 0xb35   :  { %2835 = vmatmul.mubr.msk.bf16.vlgmr.msra.gmra.mrb[48].mxu1 %vm149_vm0, %v1252_v30 }
 0xb36   :  { %2840 = vmatprep.mubr.msk.bf16.mxu1 %vm3284_vm2, %v3283_v50  ;;  %2839 = vmatpush3.bf16.msra.mxu1 %v3046_v31 }
 0xb37   :  { %2844 = vmatprep.subr.bf16.mxu1 %v3047_v28 }
 0xc08   :  { %v1302_v49 = vpop.f32.mrb[48].mxu1 }
 0xc09   :  { %vm1308_vm7 = vcmp.ge.f32.partialorder %v1302_v49, 0.0  ;;  %v1309_v33 = vmul.f32 0.01, %v1302_v49  ;;  %v2836_v35 = vpop.f32.mrb[49].mxu1 }
 0xc0a   :  { %v1305_v37 = vpop.f32.mrb[50].mxu1 }
 0xc0b   :  { %v1310_v11 = vsel %vm1308_vm7, %v1302_v49, %v1309_v33  ;;  %v2837_v38 = vpop.f32.mrb[51].mxu1 }
 0xc0c   :  { %v1311_v18 = vpack.c.bf16 %v1310_v11, %v1310_v11 }
 0xc0e   :  { %2841 = vmatmul.mubr.msk.bf16.vlgmr.msra.gmra.mrb[52].mxu1 %vm391_vm3, %v1311_v18 }
 0xc0f   :  { %2845 = vmatpush3.bf16.msra.mxu1 %v3047_v28  ;;  %2848 = vmatprep.mubr.msk.bf16.mxu1 %vm149_vm0, %v3049_v39 }
 0xc10   :  { %2846 = vmatprep.subr.bf16.mxu1 %v3048_v40 }
 0xc13   :  { %2847 = vmatpush3.bf16.msra.mxu1 %v3048_v40 }
 0xc14   :  { %2868 = vmatprep.subr.bf16.mxu1 %v3283_v50 }
 0xc16   :  { %2849 = vmatmul.mubr.msk.bf16.vlgmr.msra.gmra.mrb[56].mxu1 %vm149_vm0, %v3050_v42  ;;  %v3195_v42 = vld [vmem:[#allocation5] ss:$0 sm:$0xff] }
 0xc17   :  { %2874 = vmatprep.mubr.msk.bf16.mxu1 %vm3284_vm2, %v3283_v50 }
 0xce1   :  { %v1355_v45 = vpop.f32.mrb[52].mxu1 }
 0xce2   :  { %v1356_v47 = vadd.f32 %v1355_v45, %v118_v43  ;;  %v2842_v48 = vpop.f32.mrb[53].mxu1 }
 0xce3   :  { %v1358_v8 = vpop.f32.mrb[54].mxu1 }
 0xce4   :  { %2475 = vst.msk [vmem:[#allocation7] sm:$0x1] %vm2474_vm8, %v1356_v47  ;;  %v2843_v13 = vpop.f32.mrb[55].mxu1 }
 0xce5   :  { %v3196_v13 = vld [vmem:[%s4186_s5] ss:$0 sm:$0xff] }
 0xce9   :  { %v2850_v51 = vpop.f32.mrb[56].mxu1 }
 0xcea   :  { %v1433_v53 = vpop.f32.mrb[57].mxu1  ;;  %v3849_v59 = vadd.f32 %v3192_v58, %v2850_v51 }
 0xceb   :  { %v3844_v55 = vadd.f32 %v3191_v54, %v1433_v53  ;;  %v2851_v56 = vpop.f32.mrb[58].mxu1 }
 0xcec   :  { %v1436_v57 = vpop.f32.mrb[59].mxu1  ;;  %v3861_v0 = vadd.f32 %v3194_v63, %v2851_v56  ;;  %v1458_v41 = vsel %vm149_vm0, %v3849_v59, 0.0 }
 0xced   :  { %v3854_v61 = vadd.f32 %v3193_v60, %v1436_v57  ;;  %v1452_v62 = vsel %vm149_vm0, %v3844_v55, 0.0 }
 0xcee   :  { %1453 = vadd.xlane.f32.xlu0 %v1452_v62  ;;  %v1461_v3 = vsel %vm149_vm0, %v3861_v0, 0.0 }
 0xcef   :  { %v1455_v44 = vsel %vm149_vm0, %v3854_v61, 0.0 }
 0xcf0   :  { %1456 = vadd.xlane.f32.xlu1 %v1455_v44 }
 0xcf2   :  { %1459 = vadd.xlane.f32.xlu0 %v1458_v41 }
 0xcf4   :  { %1462 = vadd.xlane.f32.xlu1 %v1461_v3 }
 0xd7b   :  { %v1454_v36 = vpop.xlane.xlu0 %1453 }
 0xd7c   :  { %v1464_v1 = vmul.f32 0.03125, %v1454_v36 }
 0xd7d   :  { %v1457_v2 = vpop.xlane.xlu1 %1456 }
 0xd7e   :  { %v1468_v4 = vsub.f32 %v3844_v55, %v1464_v1  ;;  %v1465_v5 = vmul.f32 0.03125, %v1457_v2 }
 0xd7f   :  { %v1460_v6 = vpop.xlane.xlu0 %1459 }
 0xd80   :  { %v1469_v7 = vsub.f32 %v3854_v61, %v1465_v5  ;;  %v1466_v10 = vmul.f32 0.03125, %v1460_v6  ;;  %v1472_v12 = vmul.f32 %v1468_v4, %v1468_v4 }
 0xd81   :  { %v1463_v9 = vpop.xlane.xlu1 %1462 }
 0xd82   :  { %v1470_v14 = vsub.f32 %v3849_v59, %v1466_v10  ;;  %v1467_v15 = vmul.f32 0.03125, %v1463_v9  ;;  %v1476_v16 = vsel %vm149_vm0, %v1472_v12, 0.0  ;;  %v1473_v17 = vmul.f32 %v1469_v7, %v1469_v7 }
 0xd83   :  { %1477 = vadd.xlane.f32.xlu0 %v1476_v16 }
 0xd84   :  { %v1471_v19 = vsub.f32 %v3861_v0, %v1467_v15  ;;  %v1479_v21 = vsel %vm149_vm0, %v1473_v17, 0.0  ;;  %v1474_v22 = vmul.f32 %v1470_v14, %v1470_v14 }
 0xd85   :  { %1480 = vadd.xlane.f32.xlu1 %v1479_v21 }
 0xd86   :  { %v1482_v23 = vsel %vm149_vm0, %v1474_v22, 0.0  ;;  %v1475_v24 = vmul.f32 %v1471_v19, %v1471_v19 }
 0xd87   :  { %1483 = vadd.xlane.f32.xlu0 %v1482_v23 }
 0xd88   :  { %v1485_v25 = vsel %vm149_vm0, %v1475_v24, 0.0 }
 0xd89   :  { %1486 = vadd.xlane.f32.xlu1 %v1485_v25 }
 0xe10   :  { %v1478_v26 = vpop.xlane.xlu0 %1477 }
 0xe11   :  { %v1488_v27 = vmul.f32 0.03125, %v1478_v26 }
 0xe12   :  { %v1481_v29 = vpop.xlane.xlu1 %1480 }
 0xe13   :  { %v1492_v30 = vadd.f32 1e-05, %v1488_v27  ;;  %v1489_v31 = vmul.f32 0.03125, %v1481_v29 }
 0xe14   :  { %v1484_v28 = vpop.xlane.xlu0 %1483 }
 0xe15   :  { %3121 = vrsqrt.f32 %v1492_v30  ;;  %v1493_v49 = vadd.f32 1e-05, %v1489_v31  ;;  %v1490_v33 = vmul.f32 0.03125, %v1484_v28 }
 0xe16   :  { %v1487_v35 = vpop.xlane.xlu1 %1486 }
 0xe17   :  { %3123 = vrsqrt.f32 %v1493_v49  ;;  %v1494_v37 = vadd.f32 1e-05, %v1490_v33  ;;  %v1491_v11 = vmul.f32 0.03125, %v1487_v35 }
 0xe19   :  { %3125 = vrsqrt.f32 %v1494_v37  ;;  %v1495_v38 = vadd.f32 1e-05, %v1491_v11 }
 0xe1b   :  { %3127 = vrsqrt.f32 %v1495_v38 }
 0xe1f   :  { %v3122_v39 = vpop.eup %3121 }
 0xe20   :  { %v1500_v18 = vmul.f32 %v3122_v39, %v1468_v4 }
 0xe21   :  { %v3124_v40 = vpop.eup %3123 }
 0xe22   :  { %v1504_v43 = vmul.f32 %v3195_v42, %v1500_v18  ;;  %v1501_v45 = vmul.f32 %v3124_v40, %v1469_v7 }
 0xe23   :  { %v3126_v47 = vpop.eup %3125 }
 0xe24   :  { %v1505_v48 = vmul.f32 %v3195_v42, %v1501_v45  ;;  %v1508_v51 = vadd.f32 %v3196_v13, %v1504_v43  ;;  %v1502_v54 = vmul.f32 %v3126_v47, %v1470_v14 }
 0xe25   :  { %v3128_v8 = vpop.eup %3127 }
 0xe26   :  { %v1509_v53 = vadd.f32 %v3196_v13, %v1505_v48  ;;  %v1503_v56 = vmul.f32 %v3128_v8, %v1471_v19  ;;  %v1506_v60 = vmul.f32 %v3195_v42, %v1502_v54 }
 0xe28   :  { %v1512_v57 = vpack.c.bf16 %v1509_v53, %v1508_v51  ;;  %v1507_v58 = vmul.f32 %v3195_v42, %v1503_v56  ;;  %v1510_v63 = vadd.f32 %v3196_v13, %v1506_v60 }
 0xe2a   :  { %2857 = vmatmul.mubr.msk.bf16.vlgmr.msra.gmra.mrb[52].mxu0 %vm149_vm0, %v1512_v57  ;;  %v1511_v62 = vadd.f32 %v3196_v13, %v1507_v58 }
 0xe2b   :  { %2860 = vmatprep.mubr.msk.bf16.mxu0 %vm3284_vm2, %v3283_v50 }
 0xe2c   :  { %v1513_v44 = vpack.c.bf16 %v1511_v62, %v1510_v63 }
 0xe32   :  { %2861 = vmatmul.mubr.msk.bf16.gmra.mrb[56].mxu0 %vm149_vm0, %v1513_v44 }
 0xe33   :  { %2864 = vmatprep.mubr.msk.bf16.mxu0 %vm3284_vm2, %v3283_v50 }
 0xe3a   :  { %2865 = vmatmul.mubr.msk.bf16.gmra.mrb[60].mxu0 %vm149_vm0, %v3510_v32 }
 0xe3b   :  { %2892 = vmatprep.mubr.msk.bf16.mxu0 %vm3284_vm2, %v3283_v50 }
 0xefd   :  { %v1554_v41 = vpop.f32.mrb[52].mxu0 }
 0xefe   :  { %v2858_v3 = vpop.f32.mrb[53].mxu0 }
 0xeff   :  { %v1557_v36 = vpop.f32.mrb[54].mxu0 }
 0xf00   :  { %v3890_v1 = vpack.c.bf16 %v1557_v36, %v1554_v41  ;;  %v2859_v2 = vpop.f32.mrb[55].mxu0 }
 0xf02   :  { %1582 = vrot.lane.b32.xlu0 %v3890_v1, %s3285_s23 }
 0xf05   :  { %v1562_v4 = vpop.f32.mrb[56].mxu0 }
 0xf06   :  { %v2862_v5 = vpop.f32.mrb[57].mxu0 }
 0xf07   :  { %v1565_v6 = vpop.f32.mrb[58].mxu0 }
 0xf08   :  { %v3894_v7 = vpack.c.bf16 %v1565_v6, %v1562_v4  ;;  %v2863_v10 = vpop.f32.mrb[59].mxu0 }
 0xf0a   :  { %1809 = vrot.lane.b32.xlu0 %v3894_v7, %s3286_s24  ;;  %1584 = vrot.lane.b32.xlu1 %v3894_v7, %s3285_s23 }
 0xf0d   :  { %v1570_v32 = vpop.f32.mrb[60].mxu0 }
 0xf0e   :  { %v3900_v12 = vpack.c.bf16 %v1570_v32, %v1570_v32  ;;  %1801 = vrot.lane.b32.xlu0 %v3890_v1, %s3287_s28  ;;  %v2866_v9 = vpop.f32.mrb[61].mxu0 }
 0xf0f   :  { %v1573_v14 = vpop.f32.mrb[62].mxu0 }
 0xf10   :  { %1586 = vrot.lane.b32.xlu1 %v3900_v12, %s3285_s23  ;;  %v2867_v15 = vpop.f32.mrb[63].mxu0 }
 0xf12   :  { %1805 = vrot.lane.b32.xlu0 %v3900_v12, %s3287_s28 }
 0xf14   :  { %1807 = vrot.lane.b32.xlu1 %v3890_v1, %s3286_s24 }
 0xf18   :  { %1811 = vrot.lane.b32.xlu1 %v3900_v12, %s3286_s24 }
 0xf1c   :  { %1803 = vrot.lane.b32.xlu1 %v3894_v7, %s3287_s28 }
 0xf74   :  { %v1583_v16 = vpop.permute.xlu0 %1582 }
 0xf75   :  { %v1598_v17 = vsel %vm391_vm3, %v1583_v16, 0 }
 0xf76   :  { %2869 = vmatpush3.bf16.xpose.msra.mxu1 %v1598_v17 }
 0xf77   :  { %2870 = vmatprep.subr.bf16.mxu1 %v3283_v50 }
 0xf7c   :  { %v1585_v19 = vpop.permute.xlu1 %1584  ;;  %v1810_v26 = vpop.permute.xlu0 %1809 }
 0xf7d   :  { %v1601_v21 = vsel %vm391_vm3, %v1585_v19, 0  ;;  %v1826_v27 = vsel %vm391_vm3, %v1810_v26, 0 }
 0xf7e   :  { %2871 = vmatpush3.bf16.xpose.msra.mxu1 %v1601_v21 }
 0xf7f   :  { %2872 = vmatprep.subr.bf16.mxu1 %v3283_v50 }
 0xf80   :  { %v1802_v31 = vpop.permute.xlu0 %1801 }
 0xf82   :  { %v1587_v22 = vpop.permute.xlu1 %1586 }
 0xf83   :  { %v1604_v23 = vsel %vm391_vm3, %v1587_v22, 0 }
 0xf84   :  { %v1806_v49 = vpop.permute.xlu0 %1805 }
 0xf86   :  { %2873 = vmatpush3.bf16.xpose.msra.mxu1 %v1604_v23  ;;  %v1808_v24 = vpop.permute.xlu1 %1807 }
 0xf87   :  { %2904 = vmatprep.subr.bf16.mxu1 %v3283_v50  ;;  %v1823_v25 = vsel %vm391_vm3, %v1808_v24, 0 }
 0xf8a   :  { %v1812_v29 = vpop.permute.xlu1 %1811 }
 0xf8b   :  { %v1829_v30 = vsel %vm391_vm3, %v1812_v29, 0 }
 0xf8d   :  { %2875 = vmatmul.mubr.msk.bf16.vlgmr.msra.gmra.mrb[60].mxu1 %vm391_vm3, %v3890_v1 }
 0xf8e   :  { %2905 = vmatpush3.bf16.xpose.msra.mxu1 %v1823_v25  ;;  %2878 = vmatprep.mubr.msk.bf16.mxu1 %vm3284_vm2, %v3283_v50  ;;  %v1804_v28 = vpop.permute.xlu1 %1803 }
 0xf8f   :  { %2906 = vmatprep.subr.bf16.mxu1 %v3283_v50 }
 0xf95   :  { %2879 = vmatmul.mubr.msk.bf16.gmra.mrb[64].mxu1 %vm391_vm3, %v3894_v7 }
 0xf96   :  { %2907 = vmatpush3.bf16.xpose.msra.mxu1 %v1826_v27  ;;  %2882 = vmatprep.mubr.msk.bf16.mxu1 %vm3284_vm2, %v3283_v50 }
 0xf97   :  { %2908 = vmatprep.subr.bf16.mxu1 %v3283_v50 }
 0xf9d   :  { %2883 = vmatmul.mubr.msk.bf16.gmra.mrb[68].mxu1 %vm391_vm3, %v3900_v12 }
 0xf9e   :  { %2909 = vmatpush3.bf16.xpose.msra.mxu1 %v1829_v30  ;;  %2910 = vmatprep.mubr.msk.bf16.mxu1 %vm3284_vm2, %v3283_v50 }
 0xf9f   :  { %2940 = vmatprep.subr.bf16.mxu1 %v3283_v50 }
 0xfa5   :  { %2911 = vmatmul.mubr.msk.bf16.vlgmr.msra.gmra.mrb[72].mxu1 %vm391_vm3, %v1802_v31 }
 0xfa6   :  { %2914 = vmatprep.mubr.msk.bf16.mxu1 %vm3284_vm2, %v3283_v50  ;;  %2941 = vmatpush3.bf16.msra.mxu1 %v3704_v34 }
 0xfa7   :  { %2942 = vmatprep.subr.bf16.mxu1 %v3283_v50 }
 0xfaa   :  { %2943 = vmatpush3.bf16.msra.mxu1 %v3711_v52 }
 0xfab   :  { %2972 = vmatprep.subr.bf16.mxu1 %v3283_v50 }
 0xfad   :  { %2915 = vmatmul.mubr.msk.bf16.gmra.mrb[76].mxu1 %vm391_vm3, %v1804_v28 }
 0xfae   :  { %2918 = vmatprep.mubr.msk.bf16.mxu1 %vm3284_vm2, %v3283_v50 }
 0xfb5   :  { %2919 = vmatmul.mubr.msk.bf16.gmra.mrb[80].mxu1 %vm391_vm3, %v1806_v49 }
 0xfb6   :  { %2944 = vmatprep.mubr.msk.bf16.mxu1 %vm3284_vm2, %v3283_v50 }
0x1060   :  { %v1640_v33 = vpop.f32.mrb[60].mxu1 }
0x1061   :  { %v1662_v34 = vmul.f32 0.25, %v1640_v33  ;;  %v2876_v35 = vpop.f32.mrb[61].mxu1 }
0x1062   :  { %v1643_v37 = vpop.f32.mrb[62].mxu1 }
0x1063   :  { %v1663_v11 = vmul.f32 0.25, %v1643_v37  ;;  %v2877_v52 = vpop.f32.mrb[63].mxu1  ;;  %v1667_v38 = vsel %vm471_vm4, %v1662_v34, -inf }
0x1064   :  { %1668 = vmax.xlane.f32.xlu1 %v1667_v38 }
0x1065   :  { %v1670_v39 = vsel %vm471_vm4, %v1663_v11, -inf }
0x1066   :  { %1671 = vmax.xlane.f32.xlu0 %v1670_v39 }
0x1068   :  { %v1648_v18 = vpop.f32.mrb[64].mxu1 }
0x1069   :  { %v1664_v40 = vmul.f32 0.25, %v1648_v18  ;;  %v2880_v42 = vpop.f32.mrb[65].mxu1 }
0x106a   :  { %v1651_v43 = vpop.f32.mrb[66].mxu1 }
0x106b   :  { %v1665_v45 = vmul.f32 0.25, %v1651_v43  ;;  %v2881_v47 = vpop.f32.mrb[67].mxu1  ;;  %v1673_v48 = vsel %vm471_vm4, %v1664_v40, -inf }
0x106c   :  { %1674 = vmax.xlane.f32.xlu0 %v1673_v48 }
0x106d   :  { %v1676_v8 = vsel %vm471_vm4, %v1665_v45, -inf }
0x1070   :  { %1677 = vmax.xlane.f32.xlu0 %v1676_v8  ;;  %v1656_v13 = vpop.f32.mrb[68].mxu1 }
0x1071   :  { %v1666_v51 = vmul.f32 0.25, %v1656_v13  ;;  %v2884_v53 = vpop.f32.mrb[69].mxu1 }
0x1072   :  { %v1659_v54 = vpop.f32.mrb[70].mxu1 }
0x1073   :  { %v2885_v56 = vpop.f32.mrb[71].mxu1  ;;  %v1679_v57 = vsel %vm484_vm5, %v1666_v51, -inf }
0x1074   :  { %1680 = vmax.xlane.f32.xlu1 %v1679_v57 }
0x1078   :  { %v1865_v58 = vpop.f32.mrb[72].mxu1 }
0x1079   :  { %v3956_v60 = vmul.f32 0.25, %v1865_v58  ;;  %v2912_v62 = vpop.f32.mrb[73].mxu1 }
0x107a   :  { %v1868_v63 = vpop.f32.mrb[74].mxu1 }
0x107b   :  { %v3958_v44 = vmul.f32 0.25, %v1868_v63  ;;  %v2913_v41 = vpop.f32.mrb[75].mxu1  ;;  %v1892_v3 = vsel %vm471_vm4, %v3956_v60, -inf }
0x107c   :  { %1893 = vmax.xlane.f32.xlu0 %v1892_v3 }
0x107d   :  { %v1895_v36 = vsel %vm471_vm4, %v3958_v44, -inf }
0x107e   :  { %1896 = vmax.xlane.f32.xlu1 %v1895_v36 }
0x1080   :  { %v1873_v2 = vpop.f32.mrb[76].mxu1 }
0x1081   :  { %v3964_v4 = vmul.f32 0.25, %v1873_v2  ;;  %v2916_v5 = vpop.f32.mrb[77].mxu1 }
0x1082   :  { %v1876_v6 = vpop.f32.mrb[78].mxu1 }
0x1083   :  { %v3966_v10 = vmul.f32 0.25, %v1876_v6  ;;  %v2917_v32 = vpop.f32.mrb[79].mxu1  ;;  %v1898_v9 = vsel %vm471_vm4, %v3964_v4, -inf }
0x1084   :  { %1899 = vmax.xlane.f32.xlu0 %v1898_v9 }
0x1085   :  { %v1901_v14 = vsel %vm471_vm4, %v3966_v10, -inf }
0x1086   :  { %1902 = vmax.xlane.f32.xlu1 %v1901_v14 }
0x1088   :  { %v1881_v15 = vpop.f32.mrb[80].mxu1 }
0x1089   :  { %v3972_v16 = vmul.f32 0.25, %v1881_v15  ;;  %v2920_v17 = vpop.f32.mrb[81].mxu1 }
0x108a   :  { %v1884_v19 = vpop.f32.mrb[82].mxu1 }
0x108b   :  { %v2921_v21 = vpop.f32.mrb[83].mxu1  ;;  %v1904_v22 = vsel %vm484_vm5, %v3972_v16, -inf }
0x108c   :  { %1905 = vmax.xlane.f32.xlu0 %v1904_v22 }
0x1097   :  { %1727 = vrot.lane.b32.xlu1 %v3894_v7, %s3288_s1 }
0x109b   :  { %1729 = vrot.lane.b32.xlu1 %v3900_v12, %s3288_s1 }
0x109f   :  { %1950 = vrot.lane.b32.xlu1 %v3890_v1, %s3289_s25 }
0x10a2   :  { %1725 = vrot.lane.b32.xlu0 %v3890_v1, %s3288_s1 }
0x10f1   :  { %v1669_v23 = vpop.xlane.xlu1 %1668 }
0x10f2   :  { %v1682_v24 = vsub.f32 %v1662_v34, %v1669_v23 }
0x10f3   :  { %v1672_v25 = vpop.xlane.xlu0 %1671 }
0x10f4   :  { %v1687_v26 = vmul.f32 1.442695, %v1682_v24  ;;  %v1683_v27 = vsub.f32 %v1663_v11, %v1672_v25 }
0x10f6   :  { %3129 = vpow2.f32 %v1687_v26  ;;  %v1689_v29 = vmul.f32 1.442695, %v1683_v27 }
0x10f8   :  { %3131 = vpow2.f32 %v1689_v29 }
0x10f9   :  { %v1675_v30 = vpop.xlane.xlu0 %1674 }
0x10fa   :  { %v1684_v31 = vsub.f32 %v1664_v40, %v1675_v30 }
0x10fc   :  { %v1691_v28 = vmul.f32 1.442695, %v1684_v31 }
0x10fd   :  { %v1678_v49 = vpop.xlane.xlu0 %1677 }
0x10fe   :  { %3133 = vpow2.f32 %v1691_v28  ;;  %v1685_v33 = vsub.f32 %v1665_v45, %v1678_v49 }
0x1100   :  { %v3984_v35 = vpop.eup %3129  ;;  %v1693_v37 = vmul.f32 1.442695, %v1685_v33 }
0x1101   :  { %v1681_v52 = vpop.xlane.xlu1 %1680  ;;  %v1697_v1 = vsel %vm471_vm4, %v3984_v35, 0.0 }
0x1102   :  { %v3988_v34 = vpop.eup %3131  ;;  %3135 = vpow2.f32 %v1693_v37  ;;  %v1686_v11 = vsub.f32 %v1666_v51, %v1681_v52  ;;  %1698 = vadd.xlane.f32.xlu1 %v1697_v1 }
0x1103   :  { %v1700_v38 = vsel %vm471_vm4, %v3988_v34, 0.0 }
0x1104   :  { %v1695_v39 = vmul.f32 1.442695, %v1686_v11  ;;  %1701 = vadd.xlane.f32.xlu0 %v1700_v38 }
0x1106   :  { %3137 = vpow2.f32 %v1695_v39 }
0x1108   :  { %v3992_v18 = vpop.eup %3133 }
0x1109   :  { %v1894_v40 = vpop.xlane.xlu0 %1893  ;;  %v1703_v42 = vsel %vm471_vm4, %v3992_v18, 0.0 }
0x110a   :  { %v1907_v43 = vsub.f32 %v3956_v60, %v1894_v40  ;;  %1704 = vadd.xlane.f32.xlu1 %v1703_v42 }
0x110b   :  { %v1897_v45 = vpop.xlane.xlu1 %1896 }
0x110c   :  { %v3997_v47 = vpop.eup %3135  ;;  %v1912_v48 = vmul.f32 1.442695, %v1907_v43  ;;  %v1908_v8 = vsub.f32 %v3958_v44, %v1897_v45 }
0x110d   :  { %v1706_v13 = vsel %vm471_vm4, %v3997_v47, 0.0 }
0x110e   :  { %3139 = vpow2.f32 %v1912_v48  ;;  %v1914_v51 = vmul.f32 1.442695, %v1908_v8  ;;  %1707 = vadd.xlane.f32.xlu0 %v1706_v13 }
0x1110   :  { %v4002_v53 = vpop.eup %3137  ;;  %3141 = vpow2.f32 %v1914_v51 }
0x1111   :  { %v1900_v54 = vpop.xlane.xlu0 %1899  ;;  %v1709_v56 = vsel %vm484_vm5, %v4002_v53, 0.0 }
0x1112   :  { %v1909_v57 = vsub.f32 %v3964_v4, %v1900_v54  ;;  %1710 = vadd.xlane.f32.xlu1 %v1709_v56  ;;  %v3197_v56 = vld [vmem:[%s4192_s11] sm:$0xff]  }
0x1113   :  { %v1903_v58 = vpop.xlane.xlu1 %1902 }
0x1114   :  { %v1916_v60 = vmul.f32 1.442695, %v1909_v57  ;;  %v1910_v62 = vsub.f32 %v3966_v10, %v1903_v58  ;;  %v3198_v58 = vld [vmem:[%s4192_s11 + $0x8] sm:$0xff]  }
0x1116   :  { %3143 = vpow2.f32 %v1916_v60  ;;  %v1918_v63 = vmul.f32 1.442695, %v1910_v62 }
0x1117   :  { %v1728_v4 = vpop.permute.xlu1 %1727 }
0x1118   :  { %v4008_v44 = vpop.eup %3139  ;;  %3145 = vpow2.f32 %v1918_v63 }
0x1119   :  { %v1906_v41 = vpop.xlane.xlu0 %1905  ;;  %v1922_v3 = vsel %vm471_vm4, %v4008_v44, 0.0 }
0x111a   :  { %v4012_v36 = vpop.eup %3141  ;;  %v1911_v2 = vsub.f32 %v3972_v16, %v1906_v41  ;;  %1923 = vadd.xlane.f32.xlu1 %v1922_v3 }
0x111b   :  { %v1925_v5 = vsel %vm471_vm4, %v4012_v36, 0.0  ;;  %v1730_v9 = vpop.permute.xlu1 %1729 }
0x111c   :  { %v1920_v6 = vmul.f32 1.442695, %v1911_v2  ;;  %1926 = vadd.xlane.f32.xlu0 %v1925_v5  ;;  %v1743_v16 = vand.u32 %v1730_v9, %v3650_v46 }
0x111d   :  { %v1726_v10 = vpop.permute.xlu0 %1725 }
0x111e   :  { %3147 = vpow2.f32 %v1920_v6  ;;  %2887 = vmatpush3.bf16.msra.mxu0 %v1726_v10 }
0x111f   :  { %2888 = vmatprep.subr.bf16.mxu0 %v3283_v50  ;;  %v1951_v22 = vpop.permute.xlu1 %1950 }
0x1120   :  { %v4018_v32 = vpop.eup %3143 }
0x1121   :  { %v1928_v14 = vsel %vm471_vm4, %v4018_v32, 0.0 }
0x1122   :  { %v4022_v15 = vpop.eup %3145  ;;  %1929 = vadd.xlane.f32.xlu0 %v1928_v14  ;;  %2889 = vmatpush3.bf16.msra.mxu0 %v1728_v4 }
0x1123   :  { %2890 = vmatprep.subr.bf16.mxu0 %v3283_v50  ;;  %v1931_v17 = vsel %vm471_vm4, %v4022_v15, 0.0 }
0x1126   :  { %1932 = vadd.xlane.f32.xlu0 %v1931_v17  ;;  %2891 = vmatpush3.bf16.msra.mxu0 %v1743_v16 }
0x1127   :  { %2922 = vmatprep.subr.bf16.mxu0 %v3283_v50 }
0x1128   :  { %v4029_v19 = vpop.eup %3147 }
0x1129   :  { %v1934_v21 = vsel %vm484_vm5, %v4029_v19, 0.0 }
0x112a   :  { %1935 = vadd.xlane.f32.xlu0 %v1934_v21 }
0x112b   :  { %1954 = vrot.lane.b32.xlu1 %v3900_v12, %s3289_s25 }
0x1140   :  { %1952 = vrot.lane.b32.xlu0 %v3894_v7, %s3289_s25 }
0x118f   :  { %v1699_v23 = vpop.xlane.xlu1 %1698 }
0x1190   :  { %3149 = vrcp.f32 %v1699_v23 }
0x1191   :  { %v1702_v24 = vpop.xlane.xlu0 %1701 }
0x1192   :  { %3151 = vrcp.f32 %v1702_v24 }
0x1197   :  { %v1705_v25 = vpop.xlane.xlu1 %1704 }
0x1198   :  { %3153 = vrcp.f32 %v1705_v25 }
0x119a   :  { %v3150_v26 = vpop.eup %3149 }
0x119b   :  { %v1708_v27 = vpop.xlane.xlu0 %1707  ;;  %v1717_v30 = vmul.f32 %v3150_v26, %v3984_v35 }
0x119c   :  { %v3152_v29 = vpop.eup %3151  ;;  %3155 = vrcp.f32 %v1708_v27 }
0x119d   :  { %v1718_v31 = vmul.f32 %v3152_v29, %v3988_v34 }
0x119f   :  { %v1722_v28 = vpack.c.bf16 %v1718_v31, %v1717_v30  ;;  %v1711_v12 = vpop.xlane.xlu1 %1710 }
0x11a0   :  { %3157 = vrcp.f32 %v1711_v12 }
0x11a1   :  { %2893 = vmatmul.mubr.msk.bf16.vlgmr.msra.gmra.mrb[64].mxu0 %vm471_vm4, %v1722_v28 }
0x11a2   :  { %2923 = vmatpush3.bf16.msra.mxu0 %v1951_v22  ;;  %2896 = vmatprep.mubr.msk.bf16.mxu0 %vm3284_vm2, %v3283_v50  ;;  %v3154_v7 = vpop.eup %3153 }
0x11a3   :  { %2924 = vmatprep.subr.bf16.mxu0 %v3283_v50  ;;  %v1719_v33 = vmul.f32 %v3154_v7, %v3992_v18 }
0x11a6   :  { %v3156_v49 = vpop.eup %3155 }
0x11a7   :  { %v1720_v37 = vmul.f32 %v3156_v49, %v3997_v47  ;;  %v1924_v11 = vpop.xlane.xlu1 %1923 }
0x11a9   :  { %v1723_v35 = vpack.c.bf16 %v1720_v37, %v1719_v33  ;;  %v1927_v1 = vpop.xlane.xlu0 %1926 }
0x11aa   :  { %v3158_v52 = vpop.eup %3157  ;;  %3159 = vrcp.f32 %v1927_v1 }
0x11ab   :  { %2897 = vmatmul.mubr.msk.bf16.gmra.mrb[68].mxu0 %vm471_vm4, %v1723_v35  ;;  %v1721_v34 = vmul.f32 %v3158_v52, %v4002_v53  ;;  %3161 = vrcp.f32 %v1924_v11  ;;  %v1955_v43 = vpop.permute.xlu1 %1954  ;;  %v3199_v52 = vld [vmem:[%s4194_s13] sm:$0xff]  }
0x11ac   :  { %2900 = vmatprep.mubr.msk.bf16.mxu0 %vm3284_vm2, %v3283_v50  ;;  %v1968_v8 = vand.u32 %v1955_v43, %v3650_v46 }
0x11ad   :  { %v1724_v39 = vpack.c.bf16 %v1721_v34, %v1721_v34 }
0x11af   :  { %v1930_v38 = vpop.xlane.xlu0 %1929 }
0x11b3   :  { %v1933_v40 = vpop.xlane.xlu0 %1932  ;;  %2901 = vmatmul.mubr.msk.bf16.gmra.mrb[72].mxu0 %vm471_vm4, %v1724_v39 }
0x11b4   :  { %2928 = vmatprep.mubr.msk.bf16.mxu0 %vm3284_vm2, %v3283_v50  ;;  %3163 = vrcp.f32 %v1933_v40  ;;  %v3160_v42 = vpop.eup %3159 }
0x11b5   :  { %3165 = vrcp.f32 %v1930_v38  ;;  %v3162_v47 = vpop.eup %3161  ;;  %v1943_v48 = vmul.f32 %v3160_v42, %v4012_v36 }
0x11b6   :  { %v1942_v13 = vmul.f32 %v3162_v47, %v4008_v44 }
0x11b7   :  { %v1936_v18 = vpop.xlane.xlu0 %1935 }
0x11b8   :  { %3167 = vrcp.f32 %v1936_v18  ;;  %v1947_v51 = vpack.c.bf16 %v1943_v48, %v1942_v13  ;;  %v3200_v13 = vld [vmem:[%s4189_s8] ss:$0 sm:$0xff] }
0x11bb   :  { %v1953_v45 = vpop.permute.xlu0 %1952 }
0x11bc   :  { %2925 = vmatpush3.bf16.msra.mxu0 %v1953_v45 }
0x11bd   :  { %2926 = vmatprep.subr.bf16.mxu0 %v3283_v50 }
0x11be   :  { %v3164_v53 = vpop.eup %3163 }
0x11bf   :  { %v3166_v54 = vpop.eup %3165  ;;  %v1945_v46 = vmul.f32 %v3164_v53, %v4022_v15 }
0x11c0   :  { %2927 = vmatpush3.bf16.msra.mxu0 %v1968_v8  ;;  %v1944_v57 = vmul.f32 %v3166_v54, %v4018_v32 }
0x11c1   :  { %2956 = vmatprep.subr.bf16.mxu0 %v3283_v50 }
0x11c2   :  { %v1948_v60 = vpack.c.bf16 %v1945_v46, %v1944_v57  ;;  %v3168_v62 = vpop.eup %3167 }
0x11c3   :  { %2929 = vmatmul.mubr.msk.bf16.vlgmr.msra.gmra.mrb[76].mxu0 %vm471_vm4, %v1947_v51  ;;  %v1946_v63 = vmul.f32 %v3168_v62, %v4029_v19 }
0x11c4   :  { %2932 = vmatprep.mubr.msk.bf16.mxu0 %vm3284_vm2, %v3283_v50  ;;  %2957 = vmatpush3.bf16.msra.mxu0 %v3197_v56 }
0x11c5   :  { %2958 = vmatprep.subr.bf16.mxu0 %v3283_v50  ;;  %v1949_v44 = vpack.c.bf16 %v1946_v63, %v1946_v63 }
0x11c8   :  { %2959 = vmatpush3.bf16.msra.mxu0 %v3198_v58 }
0x11c9   :  { %2986 = vmatprep.subr.bf16.mxu0 %v3283_v50 }
0x11cb   :  { %2933 = vmatmul.mubr.msk.bf16.gmra.mrb[80].mxu0 %vm471_vm4, %v1948_v60 }
0x11cc   :  { %2936 = vmatprep.mubr.msk.bf16.mxu0 %vm3284_vm2, %v3283_v50 }
0x11d3   :  { %2937 = vmatmul.mubr.msk.bf16.gmra.mrb[84].mxu0 %vm471_vm4, %v1949_v44 }
0x11d4   :  { %2960 = vmatprep.mubr.msk.bf16.mxu0 %vm3284_vm2, %v3283_v50 }
0x1274   :  { %v1779_v41 = vpop.f32.mrb[64].mxu0 }
0x1275   :  { %v2894_v3 = vpop.f32.mrb[65].mxu0 }
0x1276   :  { %v1782_v36 = vpop.f32.mrb[66].mxu0 }
0x1277   :  { %v2895_v2 = vpop.f32.mrb[67].mxu0 }
0x127e   :  { %v1787_v4 = vpop.f32.mrb[68].mxu0 }
0x127f   :  { %v2898_v5 = vpop.f32.mrb[69].mxu0 }
0x1280   :  { %v1790_v6 = vpop.f32.mrb[70].mxu0 }
0x1281   :  { %v2899_v10 = vpop.f32.mrb[71].mxu0 }
0x1286   :  { %v1795_v32 = vpop.f32.mrb[72].mxu0 }
0x1287   :  { %v2902_v9 = vpop.f32.mrb[73].mxu0 }
0x1288   :  { %v1798_v14 = vpop.f32.mrb[74].mxu0 }
0x1289   :  { %v2903_v15 = vpop.f32.mrb[75].mxu0 }
0x1296   :  { %v2004_v16 = vpop.f32.mrb[76].mxu0 }
0x1297   :  { %v2930_v17 = vpop.f32.mrb[77].mxu0 }
0x1298   :  { %v2007_v19 = vpop.f32.mrb[78].mxu0 }
0x1299   :  { %v3023_v21 = vpack.i.bf16 %v2007_v19, %v2004_v16  ;;  %v2931_v22 = vpop.f32.mrb[79].mxu0 }
0x129b   :  { %3024 = vrot.lane.b32.xlu1 %v3023_v21, %s3291_s21 }
0x129e   :  { %v2012_v23 = vpop.f32.mrb[80].mxu0 }
0x129f   :  { %v2934_v24 = vpop.f32.mrb[81].mxu0 }
0x12a0   :  { %v2015_v25 = vpop.f32.mrb[82].mxu0 }
0x12a1   :  { %v3028_v26 = vpack.i.bf16 %v2015_v25, %v2012_v23  ;;  %v2935_v27 = vpop.f32.mrb[83].mxu0 }
0x12a3   :  { %3029 = vrot.lane.b32.xlu1 %v3028_v26, %s3291_s21 }
0x12a6   :  { %v2020_v29 = vpop.f32.mrb[84].mxu0 }
0x12a7   :  { %2039 = vrot.lane.b32.xlu1 %v2020_v29, %s3291_s21  ;;  %v2938_v30 = vpop.f32.mrb[85].mxu0 }
0x12a8   :  { %v2023_v31 = vpop.f32.mrb[86].mxu0 }
0x12a9   :  { %v2939_v28 = vpop.f32.mrb[87].mxu0 }
0x130d   :  { %v3025_v12 = vpop.permute.xlu1 %3024 }
0x130e   :  { %v3027_v7 = vunpack.i.h.bf16 %v3025_v12  ;;  %v3026_v49 = vunpack.i.l.bf16 %v3025_v12 }
0x1310   :  { %v2047_v33 = vsel %vm391_vm3, %v1782_v36, %v3027_v7  ;;  %v2046_v37 = vsel %vm391_vm3, %v1779_v41, %v3026_v49 }
0x1311   :  { %v2051_v35 = vpack.c.bf16 %v2047_v33, %v2046_v37 }
0x1313   :  { %2945 = vmatmul.mubr.msk.bf16.vlgmr.msra.gmra.mrb[84].mxu1 %vm149_vm0, %v2051_v35 }
0x1314   :  { %2948 = vmatprep.mubr.msk.bf16.mxu1 %vm3284_vm2, %v3283_v50  ;;  %2973 = vmatpush3.bf16.msra.mxu1 %v3199_v52 }
0x1315   :  { %v3030_v1 = vpop.permute.xlu1 %3029 }
0x1316   :  { %v3032_v34 = vunpack.i.h.bf16 %v3030_v1  ;;  %v3031_v11 = vunpack.i.l.bf16 %v3030_v1 }
0x1318   :  { %v2049_v38 = vsel %vm391_vm3, %v1790_v6, %v3032_v34  ;;  %v2048_v39 = vsel %vm391_vm3, %v1787_v4, %v3031_v11 }
0x1319   :  { %v2052_v40 = vpack.c.bf16 %v2049_v38, %v2048_v39  ;;  %v2040_v18 = vpop.permute.xlu1 %2039 }
0x131a   :  { %v2050_v42 = vsel %vm391_vm3, %v1795_v32, %v2040_v18 }
0x131b   :  { %2949 = vmatmul.mubr.msk.bf16.gmra.mrb[88].mxu1 %vm149_vm0, %v2052_v40  ;;  %v2053_v43 = vpack.c.bf16 %v2050_v42, %v2050_v42 }
0x131c   :  { %2952 = vmatprep.mubr.msk.bf16.mxu1 %vm3284_vm2, %v3283_v50 }
0x1323   :  { %2953 = vmatmul.mubr.msk.bf16.gmra.mrb[92].mxu1 %vm149_vm0, %v2053_v43 }
0x1324   :  { %2974 = vmatprep.mubr.msk.bf16.mxu1 %vm3284_vm2, %v3283_v50 }
0x13e6   :  { %v2097_v45 = vpop.f32.mrb[84].mxu1 }
0x13e7   :  { %v2119_v47 = vadd.f32 %v2097_v45, %v3844_v55  ;;  %v2946_v48 = vpop.f32.mrb[85].mxu1 }
0x13e8   :  { %v2100_v8 = vpop.f32.mrb[86].mxu1 }
0x13e9   :  { %v2124_v51 = vadd.f32 %v3200_v13, %v2119_v47  ;;  %v2120_v53 = vadd.f32 %v2100_v8, %v3854_v61  ;;  %v2947_v54 = vpop.f32.mrb[87].mxu1 }
0x13ea   :  { %v3201_v54 = vld [vmem:[%s4190_s9] ss:$0 sm:$0xff] }
0x13eb   :  { %v2125_v56 = vadd.f32 %v3200_v13, %v2120_v53  ;;  %v2129_v46 = vsel %vm149_vm0, %v2124_v51, 0.0 }
0x13ec   :  { %2130 = vadd.xlane.f32.xlu0 %v2129_v46 }
0x13ed   :  { %v2132_v57 = vsel %vm149_vm0, %v2125_v56, 0.0 }
0x13ee   :  { %v2105_v58 = vpop.f32.mrb[88].mxu1  ;;  %2133 = vadd.xlane.f32.xlu1 %v2132_v57 }
0x13ef   :  { %v2121_v55 = vadd.f32 %v2105_v58, %v3849_v59  ;;  %v2950_v60 = vpop.f32.mrb[89].mxu1 }
0x13f0   :  { %v2108_v62 = vpop.f32.mrb[90].mxu1 }
0x13f1   :  { %v2126_v63 = vadd.f32 %v3200_v13, %v2121_v55  ;;  %v2122_v44 = vadd.f32 %v2108_v62, %v3861_v0  ;;  %v2951_v41 = vpop.f32.mrb[91].mxu1  ;;  %v3202_v55 = vld [vmem:[%s4191_s10] ss:$0 sm:$0xff] }
0x13f3   :  { %v2127_v3 = vadd.f32 %v3200_v13, %v2122_v44  ;;  %v2135_v61 = vsel %vm149_vm0, %v2126_v63, 0.0 }
0x13f4   :  { %2136 = vadd.xlane.f32.xlu0 %v2135_v61  ;;  %v3203_v61 = vld [vmem:[%s4196_s15] sm:$0xff]  }
0x13f5   :  { %v2138_v5 = vsel %vm149_vm0, %v2127_v3, 0.0 }
0x13f6   :  { %v2113_v36 = vpop.f32.mrb[92].mxu1 }
0x13f7   :  { %v2123_v2 = vadd.f32 %v2113_v36, %v3454_v20  ;;  %v2954_v4 = vpop.f32.mrb[93].mxu1 }
0x13f8   :  { %2139 = vadd.xlane.f32.xlu0 %v2138_v5  ;;  %v2116_v6 = vpop.f32.mrb[94].mxu1 }
0x13f9   :  { %v4109_v10 = vadd.f32 %v3200_v13, %v2123_v2  ;;  %v2955_v59 = vpop.f32.mrb[95].mxu1  ;;  %v3204_v6 = vld [vmem:[%s4196_s15 + $0x8] sm:$0xff]  }
0x13fb   :  { %v2141_v32 = vsel %vm222_vm1, %v4109_v10, 0.0 }
0x13fc   :  { %2142 = vadd.xlane.f32.xlu0 %v2141_v32 }
0x1479   :  { %v2131_v0 = vpop.xlane.xlu0 %2130 }
0x147a   :  { %v2144_v9 = vmul.f32 0.03125, %v2131_v0 }
0x147b   :  { %v2134_v14 = vpop.xlane.xlu1 %2133 }
0x147c   :  { %v2149_v15 = vsub.f32 %v2124_v51, %v2144_v9  ;;  %v2145_v16 = vmul.f32 0.03125, %v2134_v14 }
0x147e   :  { %v2150_v17 = vsub.f32 %v2125_v56, %v2145_v16  ;;  %v2154_v19 = vmul.f32 %v2149_v15, %v2149_v15 }
0x1480   :  { %v2159_v20 = vsel %vm149_vm0, %v2154_v19, 0.0  ;;  %v2155_v21 = vmul.f32 %v2150_v17, %v2150_v17  ;;  %v3205_v19 = vld [vmem:[%s4193_s12] ss:$0 sm:$0xff] }
0x1481   :  { %v2137_v22 = vpop.xlane.xlu0 %2136  ;;  %2160 = vadd.xlane.f32.xlu1 %v2159_v20 }
0x1482   :  { %v2146_v23 = vmul.f32 0.03125, %v2137_v22  ;;  %v2162_v24 = vsel %vm149_vm0, %v2155_v21, 0.0 }
0x1483   :  { %2163 = vadd.xlane.f32.xlu0 %v2162_v24 }
0x1484   :  { %v2151_v25 = vsub.f32 %v2126_v63, %v2146_v23 }
0x1485   :  { %v2140_v26 = vpop.xlane.xlu0 %2139 }
0x1486   :  { %v2147_v27 = vmul.f32 0.03125, %v2140_v26  ;;  %v2156_v29 = vmul.f32 %v2151_v25, %v2151_v25 }
0x1488   :  { %v2152_v30 = vsub.f32 %v2127_v3, %v2147_v27  ;;  %v2165_v31 = vsel %vm149_vm0, %v2156_v29, 0.0 }
0x1489   :  { %2166 = vadd.xlane.f32.xlu1 %v2165_v31  ;;  %v2143_v28 = vpop.xlane.xlu0 %2142 }
0x148a   :  { %v2148_v12 = vmul.f32 0.03125, %v2143_v28  ;;  %v2157_v7 = vmul.f32 %v2152_v30, %v2152_v30 }
0x148c   :  { %v2153_v49 = vsub.f32 %v4109_v10, %v2148_v12  ;;  %v2168_v33 = vsel %vm149_vm0, %v2157_v7, 0.0 }
0x148d   :  { %2169 = vadd.xlane.f32.xlu0 %v2168_v33 }
0x148e   :  { %v2158_v37 = vmul.f32 %v2153_v49, %v2153_v49 }
0x1490   :  { %v2171_v35 = vsel %vm222_vm1, %v2158_v37, 0.0 }
0x1491   :  { %2172 = vadd.xlane.f32.xlu1 %v2171_v35 }
0x150e   :  { %v2161_v52 = vpop.xlane.xlu1 %2160 }
0x150f   :  { %v2174_v1 = vmul.f32 0.03125, %v2161_v52 }
0x1510   :  { %v2164_v34 = vpop.xlane.xlu0 %2163 }
0x1511   :  { %v2179_v11 = vadd.f32 1e-05, %v2174_v1  ;;  %v2175_v38 = vmul.f32 0.03125, %v2164_v34 }
0x1513   :  { %3169 = vrsqrt.f32 %v2179_v11  ;;  %v2180_v39 = vadd.f32 1e-05, %v2175_v38 }
0x1515   :  { %3171 = vrsqrt.f32 %v2180_v39 }
0x1516   :  { %v2167_v40 = vpop.xlane.xlu1 %2166 }
0x1517   :  { %v2176_v18 = vmul.f32 0.03125, %v2167_v40 }
0x1519   :  { %v2181_v42 = vadd.f32 1e-05, %v2176_v18 }
0x151a   :  { %v2170_v43 = vpop.xlane.xlu0 %2169 }
0x151b   :  { %3173 = vrsqrt.f32 %v2181_v42  ;;  %v2177_v45 = vmul.f32 0.03125, %v2170_v43 }
0x151d   :  { %v3170_v47 = vpop.eup %3169  ;;  %v2182_v48 = vadd.f32 1e-05, %v2177_v45 }
0x151e   :  { %v2189_v8 = vmul.f32 %v3170_v47, %v2149_v15  ;;  %v2173_v13 = vpop.xlane.xlu1 %2172 }
0x151f   :  { %v3172_v51 = vpop.eup %3171  ;;  %3175 = vrsqrt.f32 %v2182_v48  ;;  %v2178_v53 = vmul.f32 0.03125, %v2173_v13 }
0x1520   :  { %v2194_v56 = vmul.f32 %v3201_v54, %v2189_v8  ;;  %v2190_v46 = vmul.f32 %v3172_v51, %v2150_v17 }
0x1521   :  { %v2183_v57 = vadd.f32 1e-05, %v2178_v53 }
0x1522   :  { %v2195_v58 = vmul.f32 %v3201_v54, %v2190_v46  ;;  %v2199_v60 = vadd.f32 %v3202_v55, %v2194_v56 }
0x1523   :  { %3177 = vrsqrt.f32 %v2183_v57 }
0x1524   :  { %v2200_v62 = vadd.f32 %v3202_v55, %v2195_v58 }
0x1525   :  { %v3174_v63 = vpop.eup %3173 }
0x1526   :  { %v2191_v44 = vmul.f32 %v3174_v63, %v2151_v25  ;;  %v2204_v41 = vpack.c.bf16 %v2200_v62, %v2199_v60 }
0x1528   :  { %2961 = vmatmul.mubr.msk.bf16.vlgmr.msra.gmra.mrb[88].mxu0 %vm149_vm0, %v2204_v41  ;;  %v2196_v2 = vmul.f32 %v3201_v54, %v2191_v44 }
0x1529   :  { %v3176_v3 = vpop.eup %3175  ;;  %2964 = vmatprep.mubr.msk.bf16.mxu0 %vm3284_vm2, %v3283_v50  ;;  %2987 = vmatpush3.bf16.msra.mxu0 %v3203_v61 }
0x152a   :  { %v2192_v36 = vmul.f32 %v3176_v3, %v2152_v30  ;;  %2988 = vmatprep.subr.bf16.mxu0 %v3283_v50  ;;  %v2201_v32 = vadd.f32 %v3202_v55, %v2196_v2 }
0x152c   :  { %v2197_v4 = vmul.f32 %v3201_v54, %v2192_v36 }
0x152d   :  { %v3178_v5 = vpop.eup %3177  ;;  %2989 = vmatpush3.bf16.msra.mxu0 %v3204_v6 }
0x152e   :  { %v2193_v59 = vmul.f32 %v3178_v5, %v2153_v49  ;;  %v2202_v0 = vadd.f32 %v3202_v55, %v2197_v4  ;;  %2994 = vmatprep.subr.bf16.mxu0 %v3283_v50 }
0x1530   :  { %v2205_v9 = vpack.c.bf16 %v2202_v0, %v2201_v32  ;;  %v2198_v14 = vmul.f32 %v3201_v54, %v2193_v59 }
0x1532   :  { %2965 = vmatmul.mubr.msk.bf16.gmra.mrb[92].mxu0 %vm149_vm0, %v2205_v9  ;;  %v2203_v15 = vadd.f32 %v3202_v55, %v2198_v14 }
0x1533   :  { %2968 = vmatprep.mubr.msk.bf16.mxu0 %vm3284_vm2, %v3283_v50 }
0x1534   :  { %v2206_v16 = vpack.c.bf16 %v2203_v15, %v2203_v15 }
0x153a   :  { %2969 = vmatmul.mubr.msk.bf16.gmra.mrb[96].mxu0 %vm149_vm0, %v2206_v16 }
0x153b   :  { %2990 = vmatprep.mubr.msk.bf16.mxu0 %vm3284_vm2, %v3283_v50 }
0x15fb   :  { %v2250_v17 = vpop.f32.mrb[88].mxu0 }
0x15fc   :  { %v2251_v20 = vadd.f32 %v3205_v19, %v2250_v17  ;;  %v2962_v21 = vpop.f32.mrb[89].mxu0 }
0x15fd   :  { %v2253_v22 = vpop.f32.mrb[90].mxu0 }
0x15fe   :  { %v2272_v23 = vmul.f32 %v2251_v20, %v2251_v20  ;;  %v2254_v24 = vadd.f32 %v3205_v19, %v2253_v22  ;;  %v2963_v25 = vpop.f32.mrb[91].mxu0 }
0x1600   :  { %v2277_v26 = vmul.f32 %v2272_v23, %v2251_v20  ;;  %v2273_v27 = vmul.f32 %v2254_v24, %v2254_v24 }
0x1602   :  { %v2282_v29 = vmul.f32 0.044715, %v2277_v26  ;;  %v2278_v30 = vmul.f32 %v2273_v27, %v2254_v24 }
0x1604   :  { %v2287_v31 = vadd.f32 %v2282_v29, %v2251_v20  ;;  %v2283_v28 = vmul.f32 0.044715, %v2278_v30 }
0x1605   :  { %v2258_v12 = vpop.f32.mrb[92].mxu0 }
0x1606   :  { %v2292_v7 = vmul.f32 0.7978846, %v2287_v31  ;;  %v2288_v49 = vadd.f32 %v2283_v28, %v2254_v24  ;;  %v2259_v33 = vadd.f32 %v3205_v19, %v2258_v12  ;;  %v2966_v37 = vpop.f32.mrb[93].mxu0 }
0x1607   :  { %v2261_v35 = vpop.f32.mrb[94].mxu0 }
0x1608   :  { %3179 = vtanh.f32 %v2292_v7  ;;  %v2293_v52 = vmul.f32 0.7978846, %v2288_v49  ;;  %v2274_v1 = vmul.f32 %v2259_v33, %v2259_v33  ;;  %v2262_v34 = vadd.f32 %v3205_v19, %v2261_v35  ;;  %v2967_v11 = vpop.f32.mrb[95].mxu0  ;;  %v3206_v49 = vld [vmem:[%s4195_s14] ss:$0 sm:$0xff]  ;;  %s3292_s14 = smov [#allocation7]  }
0x1609   :  { %s2482_s4 = sshll.u32 %s3292_s14, 4  ;;  %s2483_s4 = int_to_ptr.vmem [resolvable:$true] %s2482_s4 }
0x160a   :  { %3181 = vtanh.f32 %v2293_v52  ;;  %v2279_v38 = vmul.f32 %v2274_v1, %v2259_v33  ;;  %v2275_v39 = vmul.f32 %v2262_v34, %v2262_v34  ;;  %v3207_v52 = vld [vmem:[%s4197_s16] sm:$0xff]   ;;  %s3253_s16 = scalar_lea.vmem %s2483_s4, 32  ;;  %p3258_p3 = scmp.lt.s32.totalorder %s2483_s4, %s2483_s4 }
0x160b   :  { %p3254_p2 = scmp.ne.s32.totalorder %s2483_s4, %s3253_s16  ;;  %p3259_p4 = scmp.lt.s32.totalorder %s3253_s16, %s3253_s16 }
0x160c   :  { %v2284_v40 = vmul.f32 0.044715, %v2279_v38  ;;  %v2280_v18 = vmul.f32 %v2275_v39, %v2262_v34 }
0x160d   :  { %v2266_v42 = vpop.f32.mrb[96].mxu0  ;;  %p3260_p5 = por %p3259_p4, %p3258_p3 }
0x160e   :  { %v2289_v43 = vadd.f32 %v2284_v40, %v2259_v33  ;;  %v2285_v45 = vmul.f32 0.044715, %v2280_v18  ;;  %v2267_v47 = vadd.f32 %v3205_v19, %v2266_v42  ;;  %v2970_v48 = vpop.f32.mrb[97].mxu0  ;;  %v3208_v42 = vld [vmem:[%s4198_s17] sm:$0x1] }
0x160f   :  { %v2269_v8 = vpop.f32.mrb[98].mxu0  ;;  %p3261_p6 = pnand %p3260_p5, %p3254_p2 }
0x1610   :  { %v2294_v13 = vmul.f32 0.7978846, %v2289_v43  ;;  %v2290_v51 = vadd.f32 %v2285_v45, %v2262_v34  ;;  %v2276_v53 = vmul.f32 %v2267_v47, %v2267_v47  ;;  %v2971_v54 = vpop.f32.mrb[99].mxu0 }
0x1612   :  { %v3180_v56 = vpop.eup %3179  ;;  %3183 = vtanh.f32 %v2294_v13  ;;  %v2295_v46 = vmul.f32 0.7978846, %v2290_v51  ;;  %v2281_v57 = vmul.f32 %v2276_v53, %v2267_v47 }
0x1613   :  { %v2302_v58 = vadd.f32 1.0, %v3180_v56 }
0x1614   :  { %v3182_v55 = vpop.eup %3181  ;;  %3185 = vtanh.f32 %v2295_v46  ;;  %v2286_v60 = vmul.f32 0.044715, %v2281_v57 }
0x1615   :  { %v2307_v62 = vmul.f32 0.5, %v2302_v58  ;;  %v2303_v63 = vadd.f32 1.0, %v3182_v55 }
0x1616   :  { %v2291_v44 = vadd.f32 %v2286_v60, %v2267_v47 }
0x1617   :  { %v2308_v41 = vmul.f32 0.5, %v2303_v63  ;;  %v2312_v61 = vmul.f32 %v2307_v62, %v2251_v20 }
0x1618   :  { %v2296_v3 = vmul.f32 0.7978846, %v2291_v44 }
0x1619   :  { %v2313_v36 = vmul.f32 %v2308_v41, %v2254_v24 }
0x161a   :  { %3187 = vtanh.f32 %v2296_v3 }
0x161b   :  { %v2317_v2 = vpack.c.bf16 %v2313_v36, %v2312_v61 }
0x161c   :  { %v3184_v4 = vpop.eup %3183 }
0x161d   :  { %v2304_v5 = vadd.f32 1.0, %v3184_v4  ;;  %2975 = vmatmul.mubr.msk.bf16.vlgmr.msra.gmra.mrb[96].mxu1 %vm391_vm3, %v2317_v2 }
0x161e   :  { %v3186_v6 = vpop.eup %3185  ;;  %2978 = vmatprep.mubr.msk.bf16.mxu1 %vm3284_vm2, %v3283_v50 }
0x161f   :  { %v2309_v59 = vmul.f32 0.5, %v2304_v5  ;;  %v2305_v32 = vadd.f32 1.0, %v3186_v6 }
0x1621   :  { %v2310_v0 = vmul.f32 0.5, %v2305_v32  ;;  %v2314_v9 = vmul.f32 %v2309_v59, %v2259_v33 }
0x1623   :  { %v2315_v14 = vmul.f32 %v2310_v0, %v2262_v34 }
0x1624   :  { %v3188_v15 = vpop.eup %3187 }
0x1625   :  { %v2318_v16 = vpack.c.bf16 %v2315_v14, %v2314_v9  ;;  %v2306_v17 = vadd.f32 1.0, %v3188_v15 }
0x1627   :  { %2979 = vmatmul.mubr.msk.bf16.gmra.mrb[100].mxu1 %vm391_vm3, %v2318_v16  ;;  %v2311_v19 = vmul.f32 0.5, %v2306_v17 }
0x1628   :  { %2982 = vmatprep.mubr.msk.bf16.mxu1 %vm3284_vm2, %v3283_v50 }
0x1629   :  { %v2316_v20 = vmul.f32 %v2311_v19, %v2267_v47 }
0x162b   :  { %v2319_v21 = vpack.c.bf16 %v2316_v20, %v2316_v20 }
0x162f   :  { %2983 = vmatmul.mubr.msk.bf16.gmra.mrb[104].mxu1 %vm391_vm3, %v2319_v21 }
0x16f0   :  { %v2363_v22 = vpop.f32.mrb[96].mxu1 }
0x16f1   :  { %v2976_v23 = vpop.f32.mrb[97].mxu1 }
0x16f2   :  { %v2365_v24 = vpop.f32.mrb[98].mxu1 }
0x16f3   :  { %v2977_v25 = vpop.f32.mrb[99].mxu1 }
0x16fa   :  { %v2369_v26 = vpop.f32.mrb[100].mxu1 }
0x16fb   :  { %v2980_v27 = vpop.f32.mrb[101].mxu1 }
0x16fc   :  { %v2371_v29 = vpop.f32.mrb[102].mxu1 }
0x16fd   :  { %v2981_v30 = vpop.f32.mrb[103].mxu1 }
0x1702   :  { %v2375_v31 = vpop.f32.mrb[104].mxu1 }
0x1703   :  { %v2381_v28 = vadd.f32 %v2375_v31, %v4109_v10  ;;  %v2984_v12 = vpop.f32.mrb[105].mxu1 }
0x1704   :  { %v2378_v7 = vpop.f32.mrb[106].mxu1 }
0x1705   :  { %v2382_v33 = vadd.f32 %v3206_v49, %v2381_v28  ;;  %v2985_v37 = vpop.f32.mrb[107].mxu1 }
0x1707   :  { %v2383_v35 = vpack.c.bf16 %v2382_v33, %v2382_v33 }
0x1709   :  { %2991 = vmatmul.mubr.msk.bf16.vlgmr.msra.gmra.mrb[100].mxu0 %vm149_vm0, %v2383_v35 }
0x170a   :  { %2995 = vmatpush3.bf16.msra.mxu0 %v3207_v52  ;;  %2996 = vmatprep.mubr.msk.bf16.mxu0 %vm3284_vm2, %v3283_v50 }
0x17dc   :  { %v2421_v10 = vpop.f32.mrb[100].mxu0 }
0x17dd   :  { %vm2427_vm9 = vcmp.ge.f32.partialorder %v2421_v10, 0.0  ;;  %v2428_v1 = vmul.f32 0.01, %v2421_v10  ;;  %v2992_v34 = vpop.f32.mrb[101].mxu0 }
0x17de   :  { %v2424_v11 = vpop.f32.mrb[102].mxu0 }
0x17df   :  { %v2429_v38 = vsel %vm2427_vm9, %v2421_v10, %v2428_v1  ;;  %v2993_v39 = vpop.f32.mrb[103].mxu0 }
0x17e0   :  { %v2430_v40 = vpack.c.bf16 %v2429_v38, %v2429_v38 }
0x17e2   :  { %2997 = vmatmul.mubr.msk.bf16.vlgmr.msra.gmra.mrb[104].mxu0 %vm391_vm3, %v2430_v40 }
0x18b5   :  { %v2468_v18 = vpop.f32.mrb[104].mxu0 }
0x18b6   :  { %v2469_v43 = vadd.f32 %v3208_v42, %v2468_v18  ;;  %v2998_v45 = vpop.f32.mrb[105].mxu0 }
0x18b7   :  { %v2471_v50 = vpop.f32.mrb[106].mxu0 }
0x18b8   :  { %2476 = vst.msk [vmem:[#allocation7 + $0x1] sm:$0x1] %vm2474_vm8, %v2469_v43  ;;  %v2999_v47 = vpop.f32.mrb[107].mxu0 }
0x18b9   :  { %3264 = shalt.err (!%p3261_p6)
}
0x18ba   :  { %s3265_s23 = scalar_lea.hbm %s4199_s18, 32 }
0x18bb   :  { %p3266_p7 = scmp.ne.s32.totalorder %s4199_s18, %s3265_s23  ;;  %p3269_p8 = scmp.lt.u32.totalorder %s3265_s23, %s4199_s18 }
0x18bd   :  { %p3271_p9 = pnand %p3269_p8, %p3266_p7 }
0x18bf   :  { %3274 = shalt.err (!%p3271_p9)
}
0x18c0   :  { %s3293_s1 = smov 1  }
0x18c1   :  { %2488 = dma.vmem_to_hbm [thread:$0]  %s2483_s4, 32, %s4199_s18, [#allocation4], %s3291_s21, %s3291_s21, %s3293_s1  }
0x18c2   :  { %3279 = dma.done.wait [#allocation4], 32  }
0x18c3   :  { %3280 = vsyncadd [#allocation4], 4294967264 }
0x18c4   :  { %2492 = vsyncpa [#allocation3], 1 }
0x18c5   :  { %2493 = vsyncpa [#allocation6], 1 }
0x18c6   :  { %2494 = vsyncpa [#allocation4], 1 }

</bundles_post_ra>
